<compile_context>
chip_gen: v7x
topology: tpu7x:2x2x1
jax: 0.10.0
libtpu: 0.0.40
codegen_flags: <defaults>
</compile_context>

<pallas_src>
import functools

import jax
import jax.numpy as jnp
from jax import lax
from jax.experimental import pallas as pl
from jax.experimental.pallas import tpu as pltpu

LANE = 128  # lane padding for the readout output


# ----------------------------------------------------------------------------
# Fused Pallas kernel (one grid step = TG graphs)
# ----------------------------------------------------------------------------
def fused_gcn_kernel(adj_ref, x_ref,
                     w1_ref, b1_ref, w2_ref, b2_ref, w3_ref, b3_ref,
                     wl_mean_ref, wl_max_ref, bl_ref,
                     o_ref):
    """3x (GCNConv + F.normalize(p=2, dim=1) + ReLU) + mean/max pool + Linear.

    adj_ref:     (TG, n_g, n_g) bf16   per-graph A_hat = D^-1/2 (A + I) D^-1/2
    x_ref:       (TG, n_g, Fin) bf16   per-graph node features
    w*_ref:      bf16 GCN weights, f32 biases (1, H)
    wl_mean_ref: (H, LANE) bf16  Linear rows for the mean half (zero-padded cols)
    wl_max_ref:  (H, LANE) bf16  Linear rows for the max half  (zero-padded cols)
    bl_ref:      (1, LANE) f32   Linear bias (zero-padded)
    o_ref:       (TG, LANE) f32  lane-dense output; wrapper slices [:, :C]
    """
    adj = adj_ref[...]  # (TG, n, n) bf16, block-diagonal structure exploited per graph

    def aggregate(h3):
        # Per-graph A_hat @ H: batched small matmul, f32 accumulation on the MXU.
        return jnp.einsum("gij,gjf->gif", adj, h3.astype(jnp.bfloat16),
                          preferred_element_type=jnp.float32)

    def feature_transform(h3, w_ref):
        # (TG, n, Fin) @ (Fin, Fout): collapse (TG, n) onto the sublane axis so the
        # MXU sees a single 2-D matmul (layout no-op since n_g % 8 == 0).
        tg, n, f = h3.shape
        h2 = h3.reshape(tg * n, f).astype(jnp.bfloat16)
        out = jnp.dot(h2, w_ref[...], preferred_element_type=jnp.float32)
        return out.reshape(tg, n, w_ref.shape[1])

    def norm_relu(h):
        # f32 path: F.normalize(h, p=2, dim=1, eps=1e-12) == h * rsqrt(max(||h||^2, 1e-24))
        sumsq = jnp.sum(h * h, axis=-1, keepdims=True)
        h = h * lax.rsqrt(jnp.maximum(sumsq, jnp.float32(1e-24)))
        return jnp.maximum(h, jnp.float32(0.0))

    # Layer 1 (Fin < H): contract the adjacency first.
    h = norm_relu(feature_transform(aggregate(x_ref[...]), w1_ref) + b1_ref[...])
    # Layers 2 / 3 (H -> H).
    h = norm_relu(aggregate(feature_transform(h, w2_ref)) + b2_ref[...])
    h = norm_relu(aggregate(feature_transform(h, w3_ref)) + b3_ref[...])

    # Readout: per-graph mean / max over the node axis (no masks, no (G,N,H) broadcast).
    x_mean = jnp.mean(h, axis=1)   # (TG, H) f32
    x_max = jnp.max(h, axis=1)     # (TG, H) f32  (post-ReLU, so no -inf fill needed)

    # Linear(2H, C) with the weight split; single lane-dense store.
    o_ref[...] = (
        jnp.dot(x_mean.astype(jnp.bfloat16), wl_mean_ref[...],
                preferred_element_type=jnp.float32)
        + jnp.dot(x_max.astype(jnp.bfloat16), wl_max_ref[...],
                  preferred_element_type=jnp.float32)
        + bl_ref[...]
    )


# ----------------------------------------------------------------------------
# Wrapper
# ----------------------------------------------------------------------------
@functools.partial(jax.jit, static_argnames=("out_channels",))
def graph_gcn_forward(params, adj_blocks, x_blocks, out_channels):
    g_total, n_g, fin = x_blocks.shape
    hid = params["b1"].shape[1]

    # Graphs-per-tile: keep the output block sublane dim a multiple of 8
    # (or equal to the full extent) and let the grid pipeline the rest.
    tg = 8 if g_total % 8 == 0 else g_total
    grid = (g_total // tg,)

    resident = lambda g: (0, 0)  # weights/biases stay VMEM-resident across steps

    out_pad = pl.pallas_call(
        fused_gcn_kernel,
        out_shape=jax.ShapeDtypeStruct((g_total, LANE), jnp.float32),
        grid=grid,
        in_specs=[
            pl.BlockSpec((tg, n_g, n_g), lambda g: (g, 0, 0)),   # adj blocks
            pl.BlockSpec((tg, n_g, fin), lambda g: (g, 0, 0)),   # x blocks
            pl.BlockSpec((fin, hid), resident),                  # w1
            pl.BlockSpec((1, hid), resident),                    # b1
            pl.BlockSpec((hid, hid), resident),                  # w2
            pl.BlockSpec((1, hid), resident),                    # b2
            pl.BlockSpec((hid, hid), resident),                  # w3
            pl.BlockSpec((1, hid), resident),                    # b3
            pl.BlockSpec((hid, LANE), resident),                 # wl_mean
            pl.BlockSpec((hid, LANE), resident),                 # wl_max
            pl.BlockSpec((1, LANE), resident),                   # bl
        ],
        out_specs=pl.BlockSpec((tg, LANE), lambda g: (g, 0)),
        compiler_params=pltpu.CompilerParams(
            # Graph tiles are independent: shards across v7x's two TensorCores,
            # free on v5e/v6e. Per-tile VMEM is tiny, so no vmem_limit override.
            dimension_semantics=("parallel",),
        ),
    )(adj_blocks, x_blocks,
      params["w1"], params["b1"],
      params["w2"], params["b2"],
      params["w3"], params["b3"],
      params["wl_mean"], params["wl_max"], params["bl"])

    return out_pad[:, :out_channels]


# ----------------------------------------------------------------------------
# Graph structure (precomputed once, outside the per-forward hot path)
# ----------------------------------------------------------------------------
def gcn_block_adjacency(edge_index, num_graphs, nodes_per_graph):
    """Per-graph A_hat blocks: A_hat = D^-1/2 (A + I) D^-1/2, matching PyG gcn_norm.

    Assumes nodes are numbered contiguously per graph with equal counts
    (BA2Motif-style batching); edges never cross graphs, so the dense (N, N)
    adjacency is block-diagonal and only the (G, n_g, n_g) blocks are stored.
    Scatter-ADD so duplicate edges accumulate (like PyG's scatter).
    """
    src, dst = edge_index[0], edge_index[1]
    g = dst // nodes_per_graph
    ls = src % nodes_per_graph
    ld = dst % nodes_per_graph
    adj = jnp.zeros((num_graphs, nodes_per_graph, nodes_per_graph), jnp.float32)
    adj = adj.at[g, ld, ls].add(1.0)                                  # message src -> dst
    adj = adj + jnp.eye(nodes_per_graph, dtype=jnp.float32)[None]     # self loops
    deg = jnp.sum(adj, axis=2)
    d_inv_sqrt = jnp.where(deg > 0, lax.rsqrt(deg), 0.0)
    adj = d_inv_sqrt[:, :, None] * adj * d_inv_sqrt[:, None, :]
    return adj.astype(jnp.bfloat16)   # MXU operand; f32 accumulation in-kernel


# ----------------------------------------------------------------------------
# Parameters
# ----------------------------------------------------------------------------
def init_params(key, in_channels, hidden_channels, out_channels):
    h = hidden_channels
    ks = jax.random.split(key, 5)

    def glorot(k, fan_in, fan_out):
        s = jnp.sqrt(6.0 / (fan_in + fan_out))
        return jax.random.uniform(k, (fan_in, fan_out), jnp.float32, -s, s)

    # torch Linear(2H, C): y = x @ W.T + b; store W.T = (2H, C), split into mean/max
    # halves and zero-pad columns to LANE for a lane-dense store.
    lin_bound = 1.0 / jnp.sqrt(jnp.float32(2 * h))   # torch Linear default U(+-1/sqrt(fan_in))
    wl = jax.random.uniform(ks[3], (2 * h, out_channels), jnp.float32, -lin_bound, lin_bound)
    bl = jax.random.uniform(ks[4], (1, out_channels), jnp.float32, -lin_bound, lin_bound)

    wl_mean = jnp.zeros((h, LANE), jnp.float32).at[:, :out_channels].set(wl[:h])
    wl_max = jnp.zeros((h, LANE), jnp.float32).at[:, :out_channels].set(wl[h:])
    bl_pad = jnp.zeros((1, LANE), jnp.float32).at[:, :out_channels].set(bl)

    return {
        "w1": glorot(ks[0], in_channels, h).astype(jnp.bfloat16),
        "b1": jnp.zeros((1, h), jnp.float32),
        "w2": glorot(ks[1], h, h).astype(jnp.bfloat16),
        "b2": jnp.zeros((1, h), jnp.float32),
        "w3": glorot(ks[2], h, h).astype(jnp.bfloat16),
        "b3": jnp.zeros((1, h), jnp.float32),
        "wl_mean": wl_mean.astype(jnp.bfloat16),
        "wl_max": wl_max.astype(jnp.bfloat16),
        "bl": bl_pad,
    }


# ----------------------------------------------------------------------------
# Example
# ----------------------------------------------------------------------------
if __name__ == "__main__":
    in_channels, hidden_channels, out_channels = 8, 32, 2
    nodes_per_graph, num_graphs = 8, 16          # 2 grid steps of 8 graphs each
    num_nodes = nodes_per_graph * num_graphs

    key = jax.random.PRNGKey(0)
    k_x, k_p = jax.random.split(key)

    x = jax.random.normal(k_x, (num_nodes, in_channels), jnp.float32)

    # Ring graphs (both edge directions), nodes grouped contiguously per graph.
    src_list, dst_list = [], []
    for g in range(num_graphs):
        base = g * nodes_per_graph
        for i in range(nodes_per_graph):
            a = base + i
            b = base + (i + 1) % nodes_per_graph
            src_list += [a, b]
            dst_list += [b, a]
    edge_index = jnp.array([src_list, dst_list], dtype=jnp.int32)
    # `batch` from the PyTorch forward is implied by the contiguous equal-size blocking.

    params = init_params(k_p, in_channels, hidden_channels, out_channels)

    # Static graph/batch structure: densify per-graph blocks once, outside the forward path.
    adj_blocks = gcn_block_adjacency(edge_index, num_graphs, nodes_per_graph)
    x_blocks = x.reshape(num_graphs, nodes_per_graph, in_channels).astype(jnp.bfloat16)
    adj_blocks, x_blocks = jax.block_until_ready((adj_blocks, x_blocks))

    out = graph_gcn_forward(params, adj_blocks, x_blocks, out_channels)
    jax.block_until_ready(out)

    assert out.shape == (num_graphs, out_channels)
    print("KERNEL_OK")
</pallas_src>

<mosaic_0001>
module attributes {stable_mosaic.version = 11 : i64} {
  func.func @fused_gcn_kernel(%arg0: i32, %arg1: memref<8x8x8xbf16, #tpu.memory_space<vmem>>, %arg2: memref<8x8x8xbf16, #tpu.memory_space<vmem>>, %arg3: memref<8x32xbf16, #tpu.memory_space<vmem>>, %arg4: memref<1x32xf32, #tpu.memory_space<vmem>>, %arg5: memref<32x32xbf16, #tpu.memory_space<vmem>>, %arg6: memref<1x32xf32, #tpu.memory_space<vmem>>, %arg7: memref<32x32xbf16, #tpu.memory_space<vmem>>, %arg8: memref<1x32xf32, #tpu.memory_space<vmem>>, %arg9: memref<32x128xbf16, #tpu.memory_space<vmem>>, %arg10: memref<32x128xbf16, #tpu.memory_space<vmem>>, %arg11: memref<1x128xf32, #tpu.memory_space<vmem>>, %arg12: memref<8x128xf32, #tpu.memory_space<vmem>>) attributes {dimension_semantics = [#tpu.dimension_semantics<parallel>], iteration_bounds = array<i64: 2>, scalar_prefetch = 0 : i64, scratch_operands = 0 : i64, tpu.core_type = #tpu.core_type<tc>, window_params = [{transform_indices = @transform_0, window_bounds = array<i64: 8, 8, 8>}, {transform_indices = @transform_1, window_bounds = array<i64: 8, 8, 8>}, {pipeline_mode = #tpu.pipeline_mode<synchronous>, transform_indices = @transform_2, window_bounds = array<i64: 8, 32>}, {pipeline_mode = #tpu.pipeline_mode<synchronous>, transform_indices = @transform_3, window_bounds = array<i64: 1, 32>}, {pipeline_mode = #tpu.pipeline_mode<synchronous>, transform_indices = @transform_4, window_bounds = array<i64: 32, 32>}, {pipeline_mode = #tpu.pipeline_mode<synchronous>, transform_indices = @transform_5, window_bounds = array<i64: 1, 32>}, {pipeline_mode = #tpu.pipeline_mode<synchronous>, transform_indices = @transform_6, window_bounds = array<i64: 32, 32>}, {pipeline_mode = #tpu.pipeline_mode<synchronous>, transform_indices = @transform_7, window_bounds = array<i64: 1, 32>}, {pipeline_mode = #tpu.pipeline_mode<synchronous>, transform_indices = @transform_8, window_bounds = array<i64: 32, 128>}, {pipeline_mode = #tpu.pipeline_mode<synchronous>, transform_indices = @transform_9, window_bounds = array<i64: 32, 128>}, {pipeline_mode = #tpu.pipeline_mode<synchronous>, transform_indices = @transform_10, window_bounds = array<i64: 1, 128>}, {transform_indices = @transform_11, window_bounds = array<i64: 8, 128>}]} {
    %c0 = arith.constant 0 : index
    %c0_0 = arith.constant 0 : index
    %c0_1 = arith.constant 0 : index
    %0 = vector.load %arg1[%c0, %c0_0, %c0_1] : memref<8x8x8xbf16, #tpu.memory_space<vmem>>, vector<8x8x8xbf16>
    %c0_2 = arith.constant 0 : index
    %c0_3 = arith.constant 0 : index
    %c0_4 = arith.constant 0 : index
    %1 = vector.load %arg2[%c0_2, %c0_3, %c0_4] : memref<8x8x8xbf16, #tpu.memory_space<vmem>>, vector<8x8x8xbf16>
    "tpu.trace_start"() <{level = 10 : i32, message = "gij,gjf->gif"}> : () -> ()
    %cst = arith.constant dense<0.000000e+00> : vector<8x8x8xf32>
    %2 = tpu.matmul %0, %1, %cst {dimension_numbers = #tpu.dot_dimension_numbers<[2], [1], [1], [2], [0, 0, 0, 1, 1, 2], [0], [0]>} : vector<8x8x8xbf16>, vector<8x8x8xbf16>, vector<8x8x8xf32> -> vector<8x8x8xf32>
    "tpu.trace_stop"() : () -> ()
    %3 = vector.shape_cast %2 : vector<8x8x8xf32> to vector<64x8xf32>
    %4 = arith.truncf %3 : vector<64x8xf32> to vector<64x8xbf16>
    %c0_5 = arith.constant 0 : index
    %c0_6 = arith.constant 0 : index
    %5 = vector.load %arg3[%c0_5, %c0_6] : memref<8x32xbf16, #tpu.memory_space<vmem>>, vector<8x32xbf16>
    %cst_7 = arith.constant dense<0.000000e+00> : vector<64x32xf32>
    %6 = tpu.matmul %4, %5, %cst_7 {dimension_numbers = #tpu.dot_dimension_numbers<[1], [0], [0], [1], [0, 0, 1, 1], [], []>} : vector<64x8xbf16>, vector<8x32xbf16>, vector<64x32xf32> -> vector<64x32xf32>
    %7 = vector.shape_cast %6 : vector<64x32xf32> to vector<8x8x32xf32>
    %c0_8 = arith.constant 0 : index
    %c0_9 = arith.constant 0 : index
    %8 = vector.load %arg4[%c0_8, %c0_9] : memref<1x32xf32, #tpu.memory_space<vmem>>, vector<1x32xf32>
    %9 = vector.shape_cast %8 : vector<1x32xf32> to vector<1x1x32xf32>
    %10 = vector.broadcast %9 : vector<1x1x32xf32> to vector<8x8x32xf32>
    %11 = arith.addf %7, %10 : vector<8x8x32xf32>
    %12 = arith.mulf %11, %11 : vector<8x8x32xf32>
    %cst_10 = arith.constant dense<0.000000e+00> : vector<8x8xf32>
    %13 = vector.multi_reduction <add>, %12, %cst_10 [2] : vector<8x8x32xf32> to vector<8x8xf32>
    %14 = vector.shape_cast %13 : vector<8x8xf32> to vector<8x8x1xf32>
    %cst_11 = arith.constant 1.000000e-24 : f32
    %15 = vector.broadcast %cst_11 : f32 to vector<8x8x1xf32>
    %16 = arith.maximumf %14, %15 : vector<8x8x1xf32>
    %17 = math.rsqrt %16 : vector<8x8x1xf32>
    %18 = vector.broadcast %17 : vector<8x8x1xf32> to vector<8x8x32xf32>
    %19 = arith.mulf %11, %18 : vector<8x8x32xf32>
    %cst_12 = arith.constant 0.000000e+00 : f32
    %20 = vector.broadcast %cst_12 : f32 to vector<8x8x32xf32>
    %21 = arith.maximumf %19, %20 : vector<8x8x32xf32>
    %22 = vector.shape_cast %21 : vector<8x8x32xf32> to vector<64x32xf32>
    %23 = arith.truncf %22 : vector<64x32xf32> to vector<64x32xbf16>
    %c0_13 = arith.constant 0 : index
    %c0_14 = arith.constant 0 : index
    %24 = vector.load %arg5[%c0_13, %c0_14] : memref<32x32xbf16, #tpu.memory_space<vmem>>, vector<32x32xbf16>
    %cst_15 = arith.constant dense<0.000000e+00> : vector<64x32xf32>
    %25 = tpu.matmul %23, %24, %cst_15 {dimension_numbers = #tpu.dot_dimension_numbers<[1], [0], [0], [1], [0, 0, 1, 1], [], []>} : vector<64x32xbf16>, vector<32x32xbf16>, vector<64x32xf32> -> vector<64x32xf32>
    %26 = vector.shape_cast %25 : vector<64x32xf32> to vector<8x8x32xf32>
    %27 = arith.truncf %26 : vector<8x8x32xf32> to vector<8x8x32xbf16>
    "tpu.trace_start"() <{level = 10 : i32, message = "gij,gjf->gif"}> : () -> ()
    %cst_16 = arith.constant dense<0.000000e+00> : vector<8x8x32xf32>
    %28 = tpu.matmul %0, %27, %cst_16 {dimension_numbers = #tpu.dot_dimension_numbers<[2], [1], [1], [2], [0, 0, 0, 1, 1, 2], [0], [0]>} : vector<8x8x8xbf16>, vector<8x8x32xbf16>, vector<8x8x32xf32> -> vector<8x8x32xf32>
    "tpu.trace_stop"() : () -> ()
    %c0_17 = arith.constant 0 : index
    %c0_18 = arith.constant 0 : index
    %29 = vector.load %arg6[%c0_17, %c0_18] : memref<1x32xf32, #tpu.memory_space<vmem>>, vector<1x32xf32>
    %30 = vector.shape_cast %29 : vector<1x32xf32> to vector<1x1x32xf32>
    %31 = vector.broadcast %30 : vector<1x1x32xf32> to vector<8x8x32xf32>
    %32 = arith.addf %28, %31 : vector<8x8x32xf32>
    %33 = arith.mulf %32, %32 : vector<8x8x32xf32>
    %cst_19 = arith.constant dense<0.000000e+00> : vector<8x8xf32>
    %34 = vector.multi_reduction <add>, %33, %cst_19 [2] : vector<8x8x32xf32> to vector<8x8xf32>
    %35 = vector.shape_cast %34 : vector<8x8xf32> to vector<8x8x1xf32>
    %cst_20 = arith.constant 1.000000e-24 : f32
    %36 = vector.broadcast %cst_20 : f32 to vector<8x8x1xf32>
    %37 = arith.maximumf %35, %36 : vector<8x8x1xf32>
    %38 = math.rsqrt %37 : vector<8x8x1xf32>
    %39 = vector.broadcast %38 : vector<8x8x1xf32> to vector<8x8x32xf32>
    %40 = arith.mulf %32, %39 : vector<8x8x32xf32>
    %cst_21 = arith.constant 0.000000e+00 : f32
    %41 = vector.broadcast %cst_21 : f32 to vector<8x8x32xf32>
    %42 = arith.maximumf %40, %41 : vector<8x8x32xf32>
    %43 = vector.shape_cast %42 : vector<8x8x32xf32> to vector<64x32xf32>
    %44 = arith.truncf %43 : vector<64x32xf32> to vector<64x32xbf16>
    %c0_22 = arith.constant 0 : index
    %c0_23 = arith.constant 0 : index
    %45 = vector.load %arg7[%c0_22, %c0_23] : memref<32x32xbf16, #tpu.memory_space<vmem>>, vector<32x32xbf16>
    %cst_24 = arith.constant dense<0.000000e+00> : vector<64x32xf32>
    %46 = tpu.matmul %44, %45, %cst_24 {dimension_numbers = #tpu.dot_dimension_numbers<[1], [0], [0], [1], [0, 0, 1, 1], [], []>} : vector<64x32xbf16>, vector<32x32xbf16>, vector<64x32xf32> -> vector<64x32xf32>
    %47 = vector.shape_cast %46 : vector<64x32xf32> to vector<8x8x32xf32>
    %48 = arith.truncf %47 : vector<8x8x32xf32> to vector<8x8x32xbf16>
    "tpu.trace_start"() <{level = 10 : i32, message = "gij,gjf->gif"}> : () -> ()
    %cst_25 = arith.constant dense<0.000000e+00> : vector<8x8x32xf32>
    %49 = tpu.matmul %0, %48, %cst_25 {dimension_numbers = #tpu.dot_dimension_numbers<[2], [1], [1], [2], [0, 0, 0, 1, 1, 2], [0], [0]>} : vector<8x8x8xbf16>, vector<8x8x32xbf16>, vector<8x8x32xf32> -> vector<8x8x32xf32>
    "tpu.trace_stop"() : () -> ()
    %c0_26 = arith.constant 0 : index
    %c0_27 = arith.constant 0 : index
    %50 = vector.load %arg8[%c0_26, %c0_27] : memref<1x32xf32, #tpu.memory_space<vmem>>, vector<1x32xf32>
    %51 = vector.shape_cast %50 : vector<1x32xf32> to vector<1x1x32xf32>
    %52 = vector.broadcast %51 : vector<1x1x32xf32> to vector<8x8x32xf32>
    %53 = arith.addf %49, %52 : vector<8x8x32xf32>
    %54 = arith.mulf %53, %53 : vector<8x8x32xf32>
    %cst_28 = arith.constant dense<0.000000e+00> : vector<8x8xf32>
    %55 = vector.multi_reduction <add>, %54, %cst_28 [2] : vector<8x8x32xf32> to vector<8x8xf32>
    %56 = vector.shape_cast %55 : vector<8x8xf32> to vector<8x8x1xf32>
    %cst_29 = arith.constant 1.000000e-24 : f32
    %57 = vector.broadcast %cst_29 : f32 to vector<8x8x1xf32>
    %58 = arith.maximumf %56, %57 : vector<8x8x1xf32>
    %59 = math.rsqrt %58 : vector<8x8x1xf32>
    %60 = vector.broadcast %59 : vector<8x8x1xf32> to vector<8x8x32xf32>
    %61 = arith.mulf %53, %60 : vector<8x8x32xf32>
    %cst_30 = arith.constant 0.000000e+00 : f32
    %62 = vector.broadcast %cst_30 : f32 to vector<8x8x32xf32>
    %63 = arith.maximumf %61, %62 : vector<8x8x32xf32>
    %cst_31 = arith.constant dense<0.000000e+00> : vector<8x32xf32>
    %64 = vector.multi_reduction <add>, %63, %cst_31 [1] : vector<8x8x32xf32> to vector<8x32xf32>
    %cst_32 = arith.constant 8.000000e+00 : f32
    %65 = vector.broadcast %cst_32 : f32 to vector<8x32xf32>
    %66 = arith.divf %64, %65 : vector<8x32xf32>
    %cst_33 = arith.constant dense<0xFF800000> : vector<8x32xf32>
    %67 = vector.multi_reduction <maximumf>, %63, %cst_33 [1] : vector<8x8x32xf32> to vector<8x32xf32>
    %68 = arith.truncf %66 : vector<8x32xf32> to vector<8x32xbf16>
    %c0_34 = arith.constant 0 : index
    %c0_35 = arith.constant 0 : index
    %69 = vector.load %arg9[%c0_34, %c0_35] : memref<32x128xbf16, #tpu.memory_space<vmem>>, vector<32x128xbf16>
    %cst_36 = arith.constant dense<0.000000e+00> : vector<8x128xf32>
    %70 = tpu.matmul %68, %69, %cst_36 {dimension_numbers = #tpu.dot_dimension_numbers<[1], [0], [0], [1], [0, 0, 1, 1], [], []>} : vector<8x32xbf16>, vector<32x128xbf16>, vector<8x128xf32> -> vector<8x128xf32>
    %71 = arith.truncf %67 : vector<8x32xf32> to vector<8x32xbf16>
    %c0_37 = arith.constant 0 : index
    %c0_38 = arith.constant 0 : index
    %72 = vector.load %arg10[%c0_37, %c0_38] : memref<32x128xbf16, #tpu.memory_space<vmem>>, vector<32x128xbf16>
    %cst_39 = arith.constant dense<0.000000e+00> : vector<8x128xf32>
    %73 = tpu.matmul %71, %72, %cst_39 {dimension_numbers = #tpu.dot_dimension_numbers<[1], [0], [0], [1], [0, 0, 1, 1], [], []>} : vector<8x32xbf16>, vector<32x128xbf16>, vector<8x128xf32> -> vector<8x128xf32>
    %74 = arith.addf %70, %73 : vector<8x128xf32>
    %c0_40 = arith.constant 0 : index
    %c0_41 = arith.constant 0 : index
    %75 = vector.load %arg11[%c0_40, %c0_41] : memref<1x128xf32, #tpu.memory_space<vmem>>, vector<1x128xf32>
    %76 = vector.broadcast %75 : vector<1x128xf32> to vector<8x128xf32>
    %77 = arith.addf %74, %76 : vector<8x128xf32>
    %c0_42 = arith.constant 0 : index
    %c0_43 = arith.constant 0 : index
    %78 = vector.load %arg12[%c0_42, %c0_43] : memref<8x128xf32, #tpu.memory_space<vmem>>, vector<8x128xf32>
    tpu.vector_store %arg12[%c0_42, %c0_43], %77 {strides = array<i32>} : memref<8x128xf32, #tpu.memory_space<vmem>>, vector<8x128xf32>,
    return
  }
  func.func @transform_0(%arg0: i32) -> (i32, i32, i32) {
    %c0_i32 = arith.constant 0 : i32
    %c0_i32_0 = arith.constant 0 : i32
    %c0_i32_1 = arith.constant 0 : i32
    return %arg0, %c0_i32, %c0_i32_0 : i32, i32, i32
  }
  func.func @transform_1(%arg0: i32) -> (i32, i32, i32) {
    %c0_i32 = arith.constant 0 : i32
    %c0_i32_0 = arith.constant 0 : i32
    %c0_i32_1 = arith.constant 0 : i32
    return %arg0, %c0_i32, %c0_i32_0 : i32, i32, i32
  }
  func.func @transform_2(%arg0: i32) -> (i32, i32) {
    %c0_i32 = arith.constant 0 : i32
    %c0_i32_0 = arith.constant 0 : i32
    %c0_i32_1 = arith.constant 0 : i32
    return %c0_i32, %c0_i32_0 : i32, i32
  }
  func.func @transform_3(%arg0: i32) -> (i32, i32) {
    %c0_i32 = arith.constant 0 : i32
    %c0_i32_0 = arith.constant 0 : i32
    %c0_i32_1 = arith.constant 0 : i32
    return %c0_i32, %c0_i32_0 : i32, i32
  }
  func.func @transform_4(%arg0: i32) -> (i32, i32) {
    %c0_i32 = arith.constant 0 : i32
    %c0_i32_0 = arith.constant 0 : i32
    %c0_i32_1 = arith.constant 0 : i32
    return %c0_i32, %c0_i32_0 : i32, i32
  }
  func.func @transform_5(%arg0: i32) -> (i32, i32) {
    %c0_i32 = arith.constant 0 : i32
    %c0_i32_0 = arith.constant 0 : i32
    %c0_i32_1 = arith.constant 0 : i32
    return %c0_i32, %c0_i32_0 : i32, i32
  }
  func.func @transform_6(%arg0: i32) -> (i32, i32) {
    %c0_i32 = arith.constant 0 : i32
    %c0_i32_0 = arith.constant 0 : i32
    %c0_i32_1 = arith.constant 0 : i32
    return %c0_i32, %c0_i32_0 : i32, i32
  }
  func.func @transform_7(%arg0: i32) -> (i32, i32) {
    %c0_i32 = arith.constant 0 : i32
    %c0_i32_0 = arith.constant 0 : i32
    %c0_i32_1 = arith.constant 0 : i32
    return %c0_i32, %c0_i32_0 : i32, i32
  }
  func.func @transform_8(%arg0: i32) -> (i32, i32) {
    %c0_i32 = arith.constant 0 : i32
    %c0_i32_0 = arith.constant 0 : i32
    %c0_i32_1 = arith.constant 0 : i32
    return %c0_i32, %c0_i32_0 : i32, i32
  }
  func.func @transform_9(%arg0: i32) -> (i32, i32) {
    %c0_i32 = arith.constant 0 : i32
    %c0_i32_0 = arith.constant 0 : i32
    %c0_i32_1 = arith.constant 0 : i32
    return %c0_i32, %c0_i32_0 : i32, i32
  }
  func.func @transform_10(%arg0: i32) -> (i32, i32) {
    %c0_i32 = arith.constant 0 : i32
    %c0_i32_0 = arith.constant 0 : i32
    %c0_i32_1 = arith.constant 0 : i32
    return %c0_i32, %c0_i32_0 : i32, i32
  }
  func.func @transform_11(%arg0: i32) -> (i32, i32) {
    %c0_i32 = arith.constant 0 : i32
    %c0_i32_0 = arith.constant 0 : i32
    return %arg0, %c0_i32 : i32, i32
  }
}

</mosaic_0001>

<bundles_post_ra>
// kernel: graph_gcn_forward.1
= control target key start
LH: loop header
LB: loop body
LE: loop exit
PB: predicated region body
PF: predicated region fallthrough
CT: control target
= control target key end

     0   :  { %s2849_s17 = smov 0   ;;  %s3276_s0 = inlined_call_operand.vmem [shape: bf16[16,8,8], index: 0, kind: input, shape index: {}]   ;;  %s3277_s1 = inlined_call_operand.vmem [shape: bf16[16,8,8], index: 1, kind: input, shape index: {}]   ;;  %s3278_s2 = inlined_call_operand.vmem [shape: bf16[8,32], index: 2, kind: input, shape index: {}]   ;;  %s3279_s3 = inlined_call_operand.vmem [shape: f32[1,32], index: 3, kind: input, shape index: {}]   ;;  %s3280_s4 = inlined_call_operand.vmem [shape: bf16[32,32], index: 4, kind: input, shape index: {}]   ;;  %s3281_s5 = inlined_call_operand.vmem [shape: f32[1,32], index: 5, kind: input, shape index: {}]   ;;  %s3282_s6 = inlined_call_operand.vmem [shape: bf16[32,32], index: 6, kind: input, shape index: {}]   ;;  %s3283_s7 = inlined_call_operand.vmem [shape: f32[1,32], index: 7, kind: input, shape index: {}]   ;;  %s3284_s8 = inlined_call_operand.vmem [shape: bf16[32,128], index: 8, kind: input, shape index: {}]   ;;  %s3285_s9 = inlined_call_operand.vmem [shape: bf16[32,128], index: 9, kind: input, shape index: {}]   ;;  %s3286_s10 = inlined_call_operand.vmem [shape: f32[1,128], index: 10, kind: input, shape index: {}]   ;;  %s3287_s11 = inlined_call_operand.vmem [shape: f32[16,128], index: 11, kind: output, shape index: {}]  }
   0x1 LB: > { %s2855_s18 = sadd.s32 4294967295, %s2785_s17   ;;  %p2389_p0 = scmp.ge.s32.totalorder %s2785_s17, 1  ;;  %s2785_s17 = sphi %s2849_s17, %s21_s17  }
   0x2   : > { %p349_p1 = scmp.lt.s32.totalorder %s2785_s17, 3 }
   0x4   : > { %p350_p2 = pnand %p2389_p0, %p349_p1 }
   0x5   : > { %s2390_s19 = sshll.u32 (!%p350_p2), %s2855_s18, 3  ;;  %v2787_v0 = vmov (!%p350_p2), 0.0   ;;  %vm2788_vm0 = vmmov (!%p350_p2), 0   ;;  %vm430_vm1 = vcmask (!%p350_p2), 1043456   ;;  %vm426_vm2 = vcmask (!%p350_p2), 64512   ;;  %p405_p4 = scmp.lt.s32.totalorder (!%p350_p2), %s2855_s18, 1 }
   0x6   : > { %353 = sbr.rel (%p350_p2) target bundleno = 2105 (0x839), region = 64  ;;  %2518 = vmatprep.subr.bf16.mxu0 (!%p350_p2), %v2787_v0  ;;  %2524 = vmatprep.subr.bf16.mxu1 (!%p350_p2), %v2787_v0  ;;  %p394_p3 = scmp.lt.s32.totalorder (!%p350_p2), %s2390_s19, 15  ;;  %v800_v25 = vld [vmem:[%s3278_s2] sm:$0xf] (!%p350_p2)  ;;  %vm904_vm3 = vcmask (!%p350_p2), 261120   ;;  %vm2162_vm4 = vcmask (!%p350_p2), 1041409  }
   0x7   : > { %2520 = vmatprep.mubr.msk.bf16.mxu0 (!%p350_p2), %vm2788_vm0, %v2787_v0  ;;  %2526 = vmatprep.mubr.msk.bf16.mxu1 (!%p350_p2), %vm2788_vm0, %v2787_v0  ;;  %v814_v26 = vsel (!%p350_p2), %vm430_vm1, %v800_v25, 0  ;;  %v2407_v63 = vld [vmem:[%s3279_s3] ss:$0 sm:$0xff] (!%p350_p2)  ;;  %vm2164_vm5 = vcmask (!%p350_p2), 1042434   ;;  %vm2166_vm6 = vcmask (!%p350_p2), 1043459   ;;  %vm2168_vm7 = vcmask (!%p350_p2), 1044484  }
   0x8   : > { %vm2170_vm8 = vcmask (!%p350_p2), 1045509   ;;  %vm2172_vm9 = vcmask (!%p350_p2), 1046534   ;;  %vm2174_vm10 = vcmask (!%p350_p2), 1047559  }
   0xd   : > { %s3289_s19 = smov (!%p394_p3, %s2390_s19), 15  ;;  %s3291_s18 = smov (!%p405_p4, %s2855_s18), 1 }
   0xe   : > { %s2391_s20 = sshll.u32 %s3289_s19, 2  ;;  %s2394_s15 = sshll.u32 %s3291_s18, 3 }
   0xf   : > { %s2869_s23 = scalar_lea.vmem %s3277_s1, %s2391_s20  ;;  %s2874_s26 = scalar_lea.vmem %s3276_s0, %s2391_s20 }
  0x10   : > { %v418_v1 = vld [vmem:[%s2869_s23] sm:$0xf]  ;;  %v419_v2 = vld [vmem:[%s2869_s23 + $0x4] sm:$0xf]  ;;  %v420_v5 = vld [vmem:[%s2869_s23 + $0x8] sm:$0xf]  ;;  %s408_s22 = scalar_lea.vmem %s3287_s11, %s2394_s15 }
  0x11   : > { %v432_v3 = vsel %vm430_vm1, %v418_v1, 0  ;;  %v478_v4 = vsel %vm430_vm1, %v419_v2, 0  ;;  %v2882_v6 = vld [vmem:[%s2874_s26] sm:$0xf]  ;;  %v2885_v7 = vld [vmem:[%s2874_s26 + $0x4] sm:$0xf] }
  0x12   : > { %2519 = vmatpush3.bf16.msra.mxu0 %v432_v3  ;;  %2525 = vmatpush3.bf16.msra.mxu1 %v478_v4  ;;  %v421_v8 = vld [vmem:[%s2869_s23 + $0xc] sm:$0xf]  ;;  %v524_v9 = vsel %vm430_vm1, %v420_v5, 0  ;;  %v422_v11 = vld [vmem:[%s2869_s23 + $0x10] sm:$0xf] }
  0x13   : > { %2530 = vmatprep.subr.bf16.mxu0 %v2787_v0  ;;  %2536 = vmatprep.subr.bf16.mxu1 %v2787_v0  ;;  %v570_v10 = vsel %vm430_vm1, %v421_v8, 0  ;;  %v423_v12 = vld [vmem:[%s2869_s23 + $0x14] sm:$0xf]  ;;  %v2905_v13 = vld [vmem:[%s2874_s26 + $0x8] sm:$0xf]  ;;  %v616_v15 = vsel %vm430_vm1, %v422_v11, 0 }
  0x14   : > { %v2908_v14 = vld [vmem:[%s2874_s26 + $0xc] sm:$0xf]  ;;  %v662_v16 = vsel %vm430_vm1, %v423_v12, 0  ;;  %v424_v17 = vld [vmem:[%s2869_s23 + $0x18] sm:$0xf] }
  0x15   : > { %2521 = vmatmul.mubr.msk.bf16.vlgmr.msra.gmra.mrb[0].mxu0 %vm426_vm2, %v2882_v6  ;;  %2527 = vmatmul.mubr.msk.bf16.vlgmr.msra.gmra.mrb[0].mxu1 %vm426_vm2, %v2885_v7  ;;  %v425_v18 = vld [vmem:[%s2869_s23 + $0x1c] sm:$0xf]  ;;  %v2925_v19 = vld [vmem:[%s2874_s26 + $0x10] sm:$0xf]  ;;  %v2928_v20 = vld [vmem:[%s2874_s26 + $0x14] sm:$0xf] }
  0x16   : > { %2531 = vmatpush3.bf16.msra.mxu0 %v524_v9  ;;  %2537 = vmatpush3.bf16.msra.mxu1 %v570_v10  ;;  %v708_v21 = vsel %vm430_vm1, %v424_v17, 0  ;;  %v754_v22 = vsel %vm430_vm1, %v425_v18, 0  ;;  %v2941_v23 = vld [vmem:[%s2874_s26 + $0x18] sm:$0xf]  ;;  %v2944_v24 = vld [vmem:[%s2874_s26 + $0x1c] sm:$0xf] }
  0x17   : > { %2532 = vmatprep.mubr.msk.bf16.mxu0 %vm2788_vm0, %v2787_v0  ;;  %2538 = vmatprep.mubr.msk.bf16.mxu1 %vm2788_vm0, %v2787_v0 }
  0x18   : > { %2542 = vmatprep.subr.bf16.mxu0 %v2787_v0  ;;  %2548 = vmatprep.subr.bf16.mxu1 %v2787_v0 }
  0x1d   : > { %2533 = vmatmul.mubr.msk.bf16.vlgmr.msra.gmra.mrb[4].mxu0 %vm426_vm2, %v2905_v13  ;;  %2539 = vmatmul.mubr.msk.bf16.vlgmr.msra.gmra.mrb[4].mxu1 %vm426_vm2, %v2908_v14 }
  0x1e   : > { %2543 = vmatpush3.bf16.msra.mxu0 %v616_v15  ;;  %2549 = vmatpush3.bf16.msra.mxu1 %v662_v16 }
  0x1f   : > { %2544 = vmatprep.mubr.msk.bf16.mxu0 %vm2788_vm0, %v2787_v0  ;;  %2550 = vmatprep.mubr.msk.bf16.mxu1 %vm2788_vm0, %v2787_v0 }
  0x20   : > { %2554 = vmatprep.subr.bf16.mxu0 %v2787_v0  ;;  %2560 = vmatprep.subr.bf16.mxu1 %v2787_v0 }
  0x25   : > { %2545 = vmatmul.mubr.msk.bf16.vlgmr.msra.gmra.mrb[8].mxu0 %vm426_vm2, %v2925_v19  ;;  %2551 = vmatmul.mubr.msk.bf16.vlgmr.msra.gmra.mrb[8].mxu1 %vm426_vm2, %v2928_v20 }
  0x26   : > { %2555 = vmatpush3.bf16.msra.mxu0 %v708_v21  ;;  %2561 = vmatpush3.bf16.msra.mxu1 %v754_v22 }
  0x27   : > { %2556 = vmatprep.mubr.msk.bf16.mxu0 %vm2788_vm0, %v2787_v0  ;;  %2562 = vmatprep.mubr.msk.bf16.mxu1 %vm2788_vm0, %v2787_v0 }
  0x28   : > { %2712 = vmatprep.subr.msk.bf16.mxu0 %vm430_vm1, %v800_v25 }
  0x2d   : > { %2557 = vmatmul.mubr.msk.bf16.vlgmr.msra.gmra.mrb[12].mxu0 %vm426_vm2, %v2941_v23  ;;  %2563 = vmatmul.mubr.msk.bf16.vlgmr.msra.gmra.mrb[12].mxu1 %vm426_vm2, %v2944_v24 }
  0x2e   : > { %2567 = vmatpush3.bf16.msra.mxu0 %v814_v26 }
  0x2f   : > { %2588 = vmatprep.subr.bf16.mxu0 %v2787_v0 }
  0xe8   : > { %v468_v27 = vpop.f32.mrb[0].mxu0  ;;  %v514_v28 = vpop.f32.mrb[0].mxu1 }
  0xe9   : > { %v796_v29 = vpack.c.bf16 %v514_v28, %v468_v27  ;;  %v2522_v30 = vpop.f32.mrb[1].mxu0  ;;  %v2528_v31 = vpop.f32.mrb[1].mxu1 }
  0xea   : > { %v471_v32 = vpop.f32.mrb[2].mxu0  ;;  %v517_v33 = vpop.f32.mrb[2].mxu1 }
  0xeb   : > { %v2523_v34 = vpop.f32.mrb[3].mxu0  ;;  %v2529_v35 = vpop.f32.mrb[3].mxu1  ;;  %2568 = vmatprep.mubr.msk.bf16.mxu0 %vm426_vm2, %v796_v29 }
  0xf0   : > { %v560_v36 = vpop.f32.mrb[4].mxu0  ;;  %v606_v37 = vpop.f32.mrb[4].mxu1 }
  0xf1   : > { %v797_v38 = vpack.c.bf16 %v606_v37, %v560_v36  ;;  %v2534_v39 = vpop.f32.mrb[5].mxu0  ;;  %v2540_v40 = vpop.f32.mrb[5].mxu1 }
  0xf2   : > { %v563_v41 = vpop.f32.mrb[6].mxu0  ;;  %v609_v42 = vpop.f32.mrb[6].mxu1 }
  0xf3   : > { %v2535_v43 = vpop.f32.mrb[7].mxu0  ;;  %v2541_v44 = vpop.f32.mrb[7].mxu1  ;;  %2569 = vmatmul.mubr.msk.bf16.vlgmr.msra.gmra.mrb[16].mxu0 %vm426_vm2, %v797_v38  ;;  %v2723_v41 = vld [vmem:[%s3280_s4] sm:$0xff]   ;;  %v2724_v42 = vld [vmem:[%s3280_s4 + $0x8] sm:$0xff]  }
  0xf4   : > { %2576 = vmatprep.subr.bf16.mxu1 %v2723_v41 }
  0xf5   : > { %2577 = vmatpush3.bf16.msra.mxu1 %v2723_v41 }
  0xf6   : > { %2578 = vmatprep.subr.bf16.mxu1 %v2724_v42 }
  0xf8   : > { %v652_v45 = vpop.f32.mrb[8].mxu0  ;;  %v698_v46 = vpop.f32.mrb[8].mxu1 }
  0xf9   : > { %v798_v47 = vpack.c.bf16 %v698_v46, %v652_v45  ;;  %v2546_v48 = vpop.f32.mrb[9].mxu0  ;;  %v2552_v49 = vpop.f32.mrb[9].mxu1  ;;  %2579 = vmatpush3.bf16.msra.mxu1 %v2724_v42 }
  0xfa   : > { %v655_v50 = vpop.f32.mrb[10].mxu0  ;;  %v701_v51 = vpop.f32.mrb[10].mxu1  ;;  %2594 = vmatprep.subr.bf16.mxu1 %v2787_v0 }
  0xfb   : > { %v2547_v52 = vpop.f32.mrb[11].mxu0  ;;  %v2553_v53 = vpop.f32.mrb[11].mxu1  ;;  %2572 = vmatprep.mubr.msk.bf16.mxu0 %vm426_vm2, %v798_v47 }
 0x100   : > { %v744_v54 = vpop.f32.mrb[12].mxu0  ;;  %v790_v55 = vpop.f32.mrb[12].mxu1 }
 0x101   : > { %v799_v56 = vpack.c.bf16 %v790_v55, %v744_v54  ;;  %v2558_v57 = vpop.f32.mrb[13].mxu0  ;;  %v2564_v58 = vpop.f32.mrb[13].mxu1 }
 0x102   : > { %v747_v59 = vpop.f32.mrb[14].mxu0  ;;  %v793_v60 = vpop.f32.mrb[14].mxu1 }
 0x103   : > { %2573 = vmatmul.mubr.msk.bf16.gmra.mrb[20].mxu0 %vm426_vm2, %v799_v56  ;;  %v2559_v61 = vpop.f32.mrb[15].mxu0  ;;  %v2565_v62 = vpop.f32.mrb[15].mxu1 }
 0x104   : > { %2590 = vmatprep.mubr.msk.bf16.mxu0 %vm2788_vm0, %v2787_v0 }
 0x1c6   : > { %v2570_v1 = vpop.f32.mrb[16].mxu0 }
 0x1c7   : > { %v2965_v2 = vadd.f32 %v2570_v1, %v2407_v63  ;;  %v850_v3 = vpop.f32.mrb[17].mxu0 }
 0x1c8   : > { %v888_v4 = vadd.f32 %v2407_v63, %v850_v3  ;;  %v2571_v5 = vpop.f32.mrb[18].mxu0 }
 0x1c9   : > { %v891_v8 = vadd.f32 %v2571_v5, %v2407_v63  ;;  %v853_v9 = vpop.f32.mrb[19].mxu0  ;;  %v898_v10 = vmul.f32 %v2965_v2, %v2965_v2 }
 0x1ca   : > { %v889_v11 = vadd.f32 %v2407_v63, %v853_v9  ;;  %v896_v12 = vmul.f32 %v888_v4, %v888_v4 }
 0x1cb   : > { %v911_v15 = vsel %vm904_vm3, %v898_v10, 0.0  ;;  %v899_v16 = vmul.f32 %v891_v8, %v891_v8 }
 0x1cc   : > { %912 = vadd.xlane.f32.xlu1 %v911_v15  ;;  %v905_v17 = vsel %vm904_vm3, %v896_v12, 0.0  ;;  %v897_v18 = vmul.f32 %v889_v11, %v889_v11 }
 0x1cd   : > { %906 = vadd.xlane.f32.xlu0 %v905_v17  ;;  %v914_v21 = vsel %vm904_vm3, %v899_v16, 0.0 }
 0x1ce   : > { %v908_v22 = vsel %vm904_vm3, %v897_v18, 0.0 }
 0x1d0   : > { %915 = vadd.xlane.f32.xlu1 %v914_v21 }
 0x1d1   : > { %909 = vadd.xlane.f32.xlu0 %v908_v22 }
 0x1d6   : > { %v2574_v25 = vpop.f32.mrb[20].mxu0 }
 0x1d7   : > { %v2973_v26 = vadd.f32 %v2574_v25, %v2407_v63  ;;  %v866_v27 = vpop.f32.mrb[21].mxu0 }
 0x1d8   : > { %v2975_v28 = vadd.f32 %v2407_v63, %v866_v27  ;;  %v2575_v29 = vpop.f32.mrb[22].mxu0 }
 0x1d9   : > { %v869_v30 = vpop.f32.mrb[23].mxu0  ;;  %v2977_v31 = vadd.f32 %v2575_v29, %v2407_v63  ;;  %v902_v34 = vmul.f32 %v2973_v26, %v2973_v26 }
 0x1da   : > { %v2979_v32 = vadd.f32 %v2407_v63, %v869_v30  ;;  %v900_v33 = vmul.f32 %v2975_v28, %v2975_v28 }
 0x1db   : > { %v923_v38 = vsel %vm904_vm3, %v902_v34, 0.0  ;;  %v903_v39 = vmul.f32 %v2977_v31, %v2977_v31 }
 0x1dc   : > { %v917_v35 = vsel %vm904_vm3, %v900_v33, 0.0  ;;  %v901_v36 = vmul.f32 %v2979_v32, %v2979_v32 }
 0x1dd   : > { %918 = vadd.xlane.f32.xlu0 %v917_v35  ;;  %v926_v40 = vsel %vm904_vm3, %v903_v39, 0.0 }
 0x1de   : > { %v920_v37 = vsel %vm904_vm3, %v901_v36, 0.0 }
 0x1df   : > { %921 = vadd.xlane.f32.xlu1 %v920_v37 }
 0x1e1   : > { %924 = vadd.xlane.f32.xlu0 %v923_v38 }
 0x1e3   : > { %927 = vadd.xlane.f32.xlu1 %v926_v40 }
 0x259   : > { %v913_v43 = vpop.xlane.xlu1 %912 }
 0x25a   : > { %v931_v44 = vmax.f32 %v913_v43, 1e-24  ;;  %v907_v45 = vpop.xlane.xlu0 %906 }
 0x25b   : > { %v929_v46 = vmax.f32 %v907_v45, 1e-24 }
 0x25d   : > { %2731 = vrsqrt.f32 %v929_v46  ;;  %v916_v47 = vpop.xlane.xlu1 %915 }
 0x25e   : > { %2733 = vrsqrt.f32 %v931_v44  ;;  %v932_v48 = vmax.f32 %v916_v47, 1e-24  ;;  %v910_v49 = vpop.xlane.xlu0 %909 }
 0x25f   : > { %v930_v50 = vmax.f32 %v910_v49, 1e-24 }
 0x260   : > { %2735 = vrsqrt.f32 %v932_v48 }
 0x261   : > { %2737 = vrsqrt.f32 %v930_v50 }
 0x267   : > { %v2732_v51 = vpop.eup %2731 }
 0x268   : > { %v2734_v52 = vpop.eup %2733  ;;  %v945_v55 = vmul.f32 %v2732_v51, %v888_v4 }
 0x269   : > { %v947_v57 = vmul.f32 %v2734_v52, %v2965_v2 }
 0x26a   : > { %v2736_v53 = vpop.eup %2735  ;;  %v919_v54 = vpop.xlane.xlu0 %918  ;;  %v953_v3 = vmax.f32 %v945_v55, 0.0 }
 0x26b   : > { %v2738_v56 = vpop.eup %2737  ;;  %v948_v58 = vmul.f32 %v2736_v53, %v891_v8  ;;  %v933_v59 = vmax.f32 %v919_v54, 1e-24  ;;  %v955_v9 = vmax.f32 %v947_v57, 0.0 }
 0x26c   : > { %v922_v60 = vpop.xlane.xlu1 %921  ;;  %v946_v61 = vmul.f32 %v2738_v56, %v889_v11  ;;  %v2414_v56 = vld [vmem:[%s3281_s5] ss:$0 sm:$0xff] }
 0x26d   : > { %v956_v62 = vmax.f32 %v948_v58, 0.0  ;;  %2739 = vrsqrt.f32 %v933_v59  ;;  %v934_v63 = vmax.f32 %v922_v60, 1e-24 }
 0x26e   : > { %v925_v1 = vpop.xlane.xlu0 %924  ;;  %v954_v5 = vmax.f32 %v946_v61, 0.0 }
 0x26f   : > { %2741 = vrsqrt.f32 %v934_v63  ;;  %v935_v10 = vmax.f32 %v925_v1, 1e-24  ;;  %v962_v16 = vpack.c.bf16 %v956_v62, %v955_v9 }
 0x270   : > { %v928_v12 = vpop.xlane.xlu1 %927  ;;  %v961_v15 = vpack.c.bf16 %v954_v5, %v953_v3 }
 0x271   : > { %2743 = vrsqrt.f32 %v935_v10  ;;  %v936_v4 = vmax.f32 %v928_v12, 1e-24 }
 0x272   : > { %2580 = vmatprep.mubr.msk.bf16.mxu1 %vm904_vm3, %v961_v15 }
 0x273   : > { %2745 = vrsqrt.f32 %v936_v4  ;;  %2581 = vmatmul.mubr.msk.bf16.vlgmr.msra.gmra.mrb[16].mxu1 %vm904_vm3, %v962_v16 }
 0x277   : > { %v2740_v2 = vpop.eup %2739 }
 0x278   : > { %v949_v8 = vmul.f32 %v2740_v2, %v2975_v28 }
 0x279   : > { %v2742_v11 = vpop.eup %2741 }
 0x27a   : > { %v950_v17 = vmul.f32 %v2742_v11, %v2979_v32  ;;  %v957_v21 = vmax.f32 %v949_v8, 0.0 }
 0x27b   : > { %v2744_v18 = vpop.eup %2743 }
 0x27c   : > { %v958_v22 = vmax.f32 %v950_v17, 0.0  ;;  %v951_v25 = vmul.f32 %v2744_v18, %v2973_v26 }
 0x27d   : > { %v2746_v27 = vpop.eup %2745 }
 0x27e   : > { %v963_v29 = vpack.c.bf16 %v958_v22, %v957_v21  ;;  %v952_v30 = vmul.f32 %v2746_v27, %v2977_v31  ;;  %v959_v33 = vmax.f32 %v951_v25, 0.0 }
 0x280   : > { %2584 = vmatprep.mubr.msk.bf16.mxu1 %vm904_vm3, %v963_v29  ;;  %v960_v34 = vmax.f32 %v952_v30, 0.0 }
 0x282   : > { %v964_v35 = vpack.c.bf16 %v960_v34, %v959_v33 }
 0x284   : > { %2585 = vmatmul.mubr.msk.bf16.gmra.mrb[20].mxu1 %vm904_vm3, %v964_v35 }
 0x285   : > { %2596 = vmatprep.mubr.msk.bf16.mxu1 %vm2788_vm0, %v2787_v0 }
 0x346   : > { %v2582_v28 = vpop.f32.mrb[16].mxu1 }
 0x347   : > { %v1027_v32 = vpop.f32.mrb[17].mxu1  ;;  %v1060_v26 = vpack.c.bf16 %v2582_v28, %v2582_v28 }
 0x348   : > { %v1058_v36 = vpack.c.bf16 %v1027_v32, %v1027_v32  ;;  %v2583_v37 = vpop.f32.mrb[18].mxu1 }
 0x349   : > { %v1030_v38 = vpop.f32.mrb[19].mxu1  ;;  %v1061_v31 = vpack.c.bf16 %v2583_v37, %v2583_v37  ;;  %v1160_v42 = vsel %vm430_vm1, %v1060_v26, 0 }
 0x34a   : > { %v1074_v39 = vsel %vm430_vm1, %v1058_v36, 0  ;;  %v1059_v40 = vpack.c.bf16 %v1030_v38, %v1030_v38 }
 0x34b   : > { %2589 = vmatpush3.bf16.msra.mxu0 %v1074_v39  ;;  %v1203_v43 = vsel %vm430_vm1, %v1061_v31, 0 }
 0x34c   : > { %v1117_v41 = vsel %vm430_vm1, %v1059_v40, 0  ;;  %2600 = vmatprep.subr.bf16.mxu0 %v2787_v0 }
 0x34d   : > { %2595 = vmatpush3.bf16.msra.mxu1 %v1117_v41 }
 0x34e   : > { %2591 = vmatmul.mubr.msk.bf16.vlgmr.msra.gmra.mrb[24].mxu0 %vm426_vm2, %v2882_v6  ;;  %2606 = vmatprep.subr.bf16.mxu1 %v2787_v0 }
 0x34f   : > { %2601 = vmatpush3.bf16.msra.mxu0 %v1160_v42  ;;  %2602 = vmatprep.mubr.msk.bf16.mxu0 %vm2788_vm0, %v2787_v0 }
 0x350   : > { %2597 = vmatmul.mubr.msk.bf16.vlgmr.msra.gmra.mrb[24].mxu1 %vm426_vm2, %v2885_v7  ;;  %2612 = vmatprep.subr.bf16.mxu0 %v2787_v0 }
 0x351   : > { %2607 = vmatpush3.bf16.msra.mxu1 %v1203_v43  ;;  %2608 = vmatprep.mubr.msk.bf16.mxu1 %vm2788_vm0, %v2787_v0 }
 0x352   : > { %2618 = vmatprep.subr.bf16.mxu1 %v2787_v0 }
 0x356   : > { %2603 = vmatmul.mubr.msk.bf16.vlgmr.msra.gmra.mrb[28].mxu0 %vm426_vm2, %v2905_v13 }
 0x357   : > { %v2586_v44 = vpop.f32.mrb[20].mxu1  ;;  %2614 = vmatprep.mubr.msk.bf16.mxu0 %vm2788_vm0, %v2787_v0 }
 0x358   : > { %v1043_v45 = vpop.f32.mrb[21].mxu1  ;;  %2609 = vmatmul.mubr.msk.bf16.vlgmr.msra.gmra.mrb[28].mxu1 %vm426_vm2, %v2908_v14  ;;  %v1064_v49 = vpack.c.bf16 %v2586_v44, %v2586_v44 }
 0x359   : > { %v1062_v46 = vpack.c.bf16 %v1043_v45, %v1043_v45  ;;  %v2587_v47 = vpop.f32.mrb[22].mxu1  ;;  %2620 = vmatprep.mubr.msk.bf16.mxu1 %vm2788_vm0, %v2787_v0 }
 0x35a   : > { %v1046_v48 = vpop.f32.mrb[23].mxu1  ;;  %v1065_v52 = vpack.c.bf16 %v2587_v47, %v2587_v47  ;;  %v1332_v54 = vsel %vm430_vm1, %v1064_v49, 0 }
 0x35b   : > { %v1246_v50 = vsel %vm430_vm1, %v1062_v46, 0  ;;  %v1063_v51 = vpack.c.bf16 %v1046_v48, %v1046_v48 }
 0x35c   : > { %2613 = vmatpush3.bf16.msra.mxu0 %v1246_v50  ;;  %v1375_v55 = vsel %vm430_vm1, %v1065_v52, 0 }
 0x35d   : > { %v1289_v53 = vsel %vm430_vm1, %v1063_v51, 0  ;;  %2624 = vmatprep.subr.bf16.mxu0 %v2787_v0 }
 0x35e   : > { %2619 = vmatpush3.bf16.msra.mxu1 %v1289_v53 }
 0x35f   : > { %2615 = vmatmul.mubr.msk.bf16.vlgmr.msra.gmra.mrb[32].mxu0 %vm426_vm2, %v2925_v19  ;;  %2630 = vmatprep.subr.bf16.mxu1 %v2787_v0 }
 0x360   : > { %2625 = vmatpush3.bf16.msra.mxu0 %v1332_v54  ;;  %2626 = vmatprep.mubr.msk.bf16.mxu0 %vm2788_vm0, %v2787_v0 }
 0x361   : > { %2621 = vmatmul.mubr.msk.bf16.vlgmr.msra.gmra.mrb[32].mxu1 %vm426_vm2, %v2928_v20 }
 0x362   : > { %2631 = vmatpush3.bf16.msra.mxu1 %v1375_v55  ;;  %2632 = vmatprep.mubr.msk.bf16.mxu1 %vm2788_vm0, %v2787_v0 }
 0x363   : > { %2648 = vmatprep.subr.bf16.mxu1 %v2787_v0 }
 0x367   : > { %2627 = vmatmul.mubr.msk.bf16.vlgmr.msra.gmra.mrb[36].mxu0 %vm426_vm2, %v2941_v23 }
 0x369   : > { %2633 = vmatmul.mubr.msk.bf16.vlgmr.msra.gmra.mrb[36].mxu1 %vm426_vm2, %v2944_v24 }
 0x36a   : > { %2650 = vmatprep.mubr.msk.bf16.mxu1 %vm2788_vm0, %v2787_v0 }
 0x421   : > { %v1110_v57 = vpop.f32.mrb[24].mxu0 }
 0x422   : > { %v3059_v58 = vadd.f32 %v2414_v56, %v1110_v57  ;;  %v2592_v59 = vpop.f32.mrb[25].mxu0 }
 0x423   : > { %v1153_v60 = vpop.f32.mrb[24].mxu1  ;;  %v1113_v61 = vpop.f32.mrb[26].mxu0 }
 0x424   : > { %v3061_v62 = vadd.f32 %v2414_v56, %v1153_v60  ;;  %v1417_v63 = vmul.f32 %v3059_v58, %v3059_v58  ;;  %v2593_v1 = vpop.f32.mrb[27].mxu0  ;;  %v2598_v3 = vpop.f32.mrb[25].mxu1  ;;  %v2726_v60 = vld [vmem:[%s3282_s6 + $0x8] sm:$0xff]  }
 0x425   : > { %v1156_v5 = vpop.f32.mrb[26].mxu1 }
 0x426   : > { %v1425_v9 = vsel %vm904_vm3, %v1417_v63, 0.0  ;;  %v1418_v10 = vmul.f32 %v3061_v62, %v3061_v62  ;;  %v2599_v12 = vpop.f32.mrb[27].mxu1 }
 0x427   : > { %1426 = vadd.xlane.f32.xlu0 %v1425_v9 }
 0x428   : > { %v1428_v15 = vsel %vm904_vm3, %v1418_v10, 0.0 }
 0x429   : > { %v1196_v4 = vpop.f32.mrb[28].mxu0  ;;  %1429 = vadd.xlane.f32.xlu1 %v1428_v15 }
 0x42a   : > { %v3069_v16 = vadd.f32 %v2414_v56, %v1196_v4  ;;  %v2604_v2 = vpop.f32.mrb[29].mxu0 }
 0x42b   : > { %v1239_v8 = vpop.f32.mrb[28].mxu1  ;;  %v1199_v11 = vpop.f32.mrb[30].mxu0 }
 0x42c   : > { %v3071_v17 = vadd.f32 %v2414_v56, %v1239_v8  ;;  %v1419_v18 = vmul.f32 %v3069_v16, %v3069_v16  ;;  %v2605_v21 = vpop.f32.mrb[31].mxu0  ;;  %v2610_v22 = vpop.f32.mrb[29].mxu1 }
 0x42d   : > { %v1242_v25 = vpop.f32.mrb[30].mxu1 }
 0x42e   : > { %v1431_v27 = vsel %vm904_vm3, %v1419_v18, 0.0  ;;  %v1420_v29 = vmul.f32 %v3071_v17, %v3071_v17  ;;  %v2611_v30 = vpop.f32.mrb[31].mxu1 }
 0x42f   : > { %1432 = vadd.xlane.f32.xlu0 %v1431_v27 }
 0x430   : > { %v1434_v33 = vsel %vm904_vm3, %v1420_v29, 0.0 }
 0x431   : > { %1435 = vadd.xlane.f32.xlu1 %v1434_v33 }
 0x432   : > { %v1282_v34 = vpop.f32.mrb[32].mxu0 }
 0x433   : > { %v3079_v35 = vadd.f32 %v2414_v56, %v1282_v34  ;;  %v2616_v28 = vpop.f32.mrb[33].mxu0 }
 0x434   : > { %v1325_v32 = vpop.f32.mrb[32].mxu1  ;;  %v1285_v36 = vpop.f32.mrb[34].mxu0 }
 0x435   : > { %v3081_v37 = vadd.f32 %v2414_v56, %v1325_v32  ;;  %v1421_v38 = vmul.f32 %v3079_v35, %v3079_v35  ;;  %v2617_v26 = vpop.f32.mrb[35].mxu0  ;;  %v2622_v39 = vpop.f32.mrb[33].mxu1 }
 0x436   : > { %v1328_v40 = vpop.f32.mrb[34].mxu1 }
 0x437   : > { %v1437_v31 = vsel %vm904_vm3, %v1421_v38, 0.0  ;;  %v1422_v41 = vmul.f32 %v3081_v37, %v3081_v37  ;;  %v2623_v42 = vpop.f32.mrb[35].mxu1 }
 0x438   : > { %1438 = vadd.xlane.f32.xlu0 %v1437_v31 }
 0x439   : > { %v1440_v43 = vsel %vm904_vm3, %v1422_v41, 0.0 }
 0x43a   : > { %v1368_v44 = vpop.f32.mrb[36].mxu0  ;;  %1441 = vadd.xlane.f32.xlu1 %v1440_v43 }
 0x43b   : > { %v3089_v45 = vadd.f32 %v2414_v56, %v1368_v44  ;;  %v2628_v46 = vpop.f32.mrb[37].mxu0 }
 0x43c   : > { %v1411_v47 = vpop.f32.mrb[36].mxu1  ;;  %v1371_v48 = vpop.f32.mrb[38].mxu0 }
 0x43d   : > { %v3091_v49 = vadd.f32 %v2414_v56, %v1411_v47  ;;  %v1423_v50 = vmul.f32 %v3089_v45, %v3089_v45  ;;  %v2634_v51 = vpop.f32.mrb[37].mxu1  ;;  %v2629_v52 = vpop.f32.mrb[39].mxu0  ;;  %v2725_v56 = vld [vmem:[%s3282_s6] sm:$0xff]  }
 0x43e   : > { %v1414_v53 = vpop.f32.mrb[38].mxu1  ;;  %2636 = vmatprep.subr.bf16.mxu0 %v2725_v56 }
 0x43f   : > { %v1443_v54 = vsel %vm904_vm3, %v1423_v50, 0.0  ;;  %v1424_v55 = vmul.f32 %v3091_v49, %v3091_v49  ;;  %v2635_v57 = vpop.f32.mrb[39].mxu1  ;;  %2637 = vmatpush3.bf16.msra.mxu0 %v2725_v56 }
 0x440   : > { %1444 = vadd.xlane.f32.xlu0 %v1443_v54  ;;  %2638 = vmatprep.subr.bf16.mxu0 %v2726_v60 }
 0x441   : > { %v1446_v59 = vsel %vm904_vm3, %v1424_v55, 0.0 }
 0x442   : > { %1447 = vadd.xlane.f32.xlu1 %v1446_v59 }
 0x443   : > { %2639 = vmatpush3.bf16.msra.mxu0 %v2726_v60 }
 0x444   : > { %2660 = vmatprep.subr.bf16.mxu0 %v2787_v0 }
 0x4b4   : > { %v1427_v61 = vpop.xlane.xlu0 %1426 }
 0x4b5   : > { %v1449_v63 = vmax.f32 %v1427_v61, 1e-24 }
 0x4b6   : > { %v1430_v1 = vpop.xlane.xlu1 %1429 }
 0x4b7   : > { %2747 = vrsqrt.f32 %v1449_v63  ;;  %v1450_v3 = vmax.f32 %v1430_v1, 1e-24 }
 0x4b9   : > { %2749 = vrsqrt.f32 %v1450_v3 }
 0x4bc   : > { %v1433_v5 = vpop.xlane.xlu0 %1432 }
 0x4bd   : > { %v1451_v9 = vmax.f32 %v1433_v5, 1e-24 }
 0x4be   : > { %v1436_v10 = vpop.xlane.xlu1 %1435 }
 0x4bf   : > { %2751 = vrsqrt.f32 %v1451_v9  ;;  %v1452_v12 = vmax.f32 %v1436_v10, 1e-24 }
 0x4c1   : > { %v2748_v15 = vpop.eup %2747  ;;  %2753 = vrsqrt.f32 %v1452_v12 }
 0x4c2   : > { %v1465_v4 = vmul.f32 %v2748_v15, %v3059_v58 }
 0x4c3   : > { %v2750_v2 = vpop.eup %2749 }
 0x4c4   : > { %v1466_v8 = vmul.f32 %v2750_v2, %v3061_v62  ;;  %v1473_v21 = vmax.f32 %v1465_v4, 0.0 }
 0x4c5   : > { %v1439_v11 = vpop.xlane.xlu0 %1438 }
 0x4c6   : > { %v1453_v18 = vmax.f32 %v1439_v11, 1e-24  ;;  %v1474_v22 = vmax.f32 %v1466_v8, 0.0 }
 0x4c7   : > { %v1442_v25 = vpop.xlane.xlu1 %1441 }
 0x4c8   : > { %2755 = vrsqrt.f32 %v1453_v18  ;;  %v1454_v27 = vmax.f32 %v1442_v25, 1e-24  ;;  %v1481_v29 = vpack.c.bf16 %v1474_v22, %v1473_v21 }
 0x4c9   : > { %v2752_v30 = vpop.eup %2751 }
 0x4ca   : > { %v1467_v33 = vmul.f32 %v2752_v30, %v3069_v16  ;;  %2757 = vrsqrt.f32 %v1454_v27  ;;  %2640 = vmatprep.mubr.msk.bf16.mxu0 %vm904_vm3, %v1481_v29 }
 0x4cb   : > { %v2754_v34 = vpop.eup %2753 }
 0x4cc   : > { %v1468_v58 = vmul.f32 %v2754_v34, %v3071_v17  ;;  %v1475_v32 = vmax.f32 %v1467_v33, 0.0 }
 0x4cd   : > { %v1445_v28 = vpop.xlane.xlu0 %1444 }
 0x4ce   : > { %v1476_v62 = vmax.f32 %v1468_v58, 0.0  ;;  %v1455_v36 = vmax.f32 %v1445_v28, 1e-24 }
 0x4cf   : > { %v1448_v38 = vpop.xlane.xlu1 %1447 }
 0x4d0   : > { %2759 = vrsqrt.f32 %v1455_v36  ;;  %v1456_v26 = vmax.f32 %v1448_v38, 1e-24  ;;  %v1482_v39 = vpack.c.bf16 %v1476_v62, %v1475_v32 }
 0x4d2   : > { %v2756_v40 = vpop.eup %2755  ;;  %2761 = vrsqrt.f32 %v1456_v26  ;;  %2641 = vmatmul.mubr.msk.bf16.vlgmr.msra.gmra.mrb[40].mxu0 %vm904_vm3, %v1482_v39 }
 0x4d3   : > { %v1469_v16 = vmul.f32 %v2756_v40, %v3079_v35 }
 0x4d4   : > { %v2758_v31 = vpop.eup %2757 }
 0x4d5   : > { %v1470_v41 = vmul.f32 %v2758_v31, %v3081_v37  ;;  %v1477_v42 = vmax.f32 %v1469_v16, 0.0 }
 0x4d7   : > { %v1478_v43 = vmax.f32 %v1470_v41, 0.0 }
 0x4d9   : > { %v1483_v17 = vpack.c.bf16 %v1478_v43, %v1477_v42 }
 0x4da   : > { %v2760_v44 = vpop.eup %2759 }
 0x4db   : > { %2644 = vmatprep.mubr.msk.bf16.mxu0 %vm904_vm3, %v1483_v17  ;;  %v1471_v46 = vmul.f32 %v2760_v44, %v3089_v45 }
 0x4dc   : > { %v2762_v47 = vpop.eup %2761 }
 0x4dd   : > { %v1472_v48 = vmul.f32 %v2762_v47, %v3091_v49  ;;  %v1479_v50 = vmax.f32 %v1471_v46, 0.0 }
 0x4df   : > { %v1480_v51 = vmax.f32 %v1472_v48, 0.0 }
 0x4e1   : > { %v1484_v52 = vpack.c.bf16 %v1480_v51, %v1479_v50 }
 0x4e3   : > { %2645 = vmatmul.mubr.msk.bf16.gmra.mrb[44].mxu0 %vm904_vm3, %v1484_v52 }
 0x4e4   : > { %2662 = vmatprep.mubr.msk.bf16.mxu0 %vm2788_vm0, %v2787_v0 }
 0x5a5   : > { %v2642_v35 = vpop.f32.mrb[40].mxu0 }
 0x5a6   : > { %v1580_v37 = vpack.c.bf16 %v2642_v35, %v2642_v35  ;;  %v1547_v53 = vpop.f32.mrb[41].mxu0 }
 0x5a7   : > { %v1578_v54 = vpack.c.bf16 %v1547_v53, %v1547_v53  ;;  %v2643_v55 = vpop.f32.mrb[42].mxu0 }
 0x5a8   : > { %v1680_v57 = vsel %vm430_vm1, %v1580_v37, 0  ;;  %v1550_v59 = vpop.f32.mrb[43].mxu0  ;;  %v1581_v60 = vpack.c.bf16 %v2643_v55, %v2643_v55 }
 0x5a9   : > { %v1594_v45 = vsel %vm430_vm1, %v1578_v54, 0  ;;  %v1579_v56 = vpack.c.bf16 %v1550_v59, %v1550_v59  ;;  %2661 = vmatpush3.bf16.msra.mxu0 %v1680_v57 }
 0x5aa   : > { %2649 = vmatpush3.bf16.msra.mxu1 %v1594_v45  ;;  %2672 = vmatprep.subr.bf16.mxu0 %v2787_v0  ;;  %v1723_v61 = vsel %vm430_vm1, %v1581_v60, 0 }
 0x5ab   : > { %2654 = vmatprep.subr.bf16.mxu1 %v2787_v0  ;;  %v1637_v49 = vsel %vm430_vm1, %v1579_v56, 0 }
 0x5ac   : > { %2663 = vmatmul.mubr.msk.bf16.vlgmr.msra.gmra.mrb[48].mxu0 %vm426_vm2, %v2905_v13 }
 0x5ad   : > { %2651 = vmatmul.mubr.msk.bf16.vlgmr.msra.gmra.mrb[40].mxu1 %vm426_vm2, %v2882_v6  ;;  %2674 = vmatprep.mubr.msk.bf16.mxu0 %vm2788_vm0, %v2787_v0 }
 0x5ae   : > { %2655 = vmatpush3.bf16.msra.mxu1 %v1637_v49  ;;  %2656 = vmatprep.mubr.msk.bf16.mxu1 %vm2788_vm0, %v2787_v0 }
 0x5af   : > { %2666 = vmatprep.subr.bf16.mxu1 %v2787_v0 }
 0x5b5   : > { %2657 = vmatmul.mubr.msk.bf16.vlgmr.msra.gmra.mrb[44].mxu1 %vm426_vm2, %v2885_v7 }
 0x5b6   : > { %2667 = vmatpush3.bf16.msra.mxu1 %v1723_v61  ;;  %v2646_v13 = vpop.f32.mrb[44].mxu0  ;;  %2668 = vmatprep.mubr.msk.bf16.mxu1 %vm2788_vm0, %v2787_v0 }
 0x5b7   : > { %v1563_v6 = vpop.f32.mrb[45].mxu0  ;;  %2678 = vmatprep.subr.bf16.mxu1 %v2787_v0  ;;  %v1584_v5 = vpack.c.bf16 %v2646_v13, %v2646_v13 }
 0x5b8   : > { %v1582_v63 = vpack.c.bf16 %v1563_v6, %v1563_v6  ;;  %v2647_v1 = vpop.f32.mrb[46].mxu0 }
 0x5b9   : > { %v1566_v3 = vpop.f32.mrb[47].mxu0  ;;  %v1852_v7 = vsel %vm430_vm1, %v1584_v5, 0  ;;  %v1585_v15 = vpack.c.bf16 %v2647_v1, %v2647_v1 }
 0x5ba   : > { %v1766_v9 = vsel %vm430_vm1, %v1582_v63, 0  ;;  %v1583_v10 = vpack.c.bf16 %v1566_v3, %v1566_v3 }
 0x5bb   : > { %2673 = vmatpush3.bf16.msra.mxu0 %v1766_v9  ;;  %v2727_v9 = vld [vmem:[%s3285_s9] sm:$0xff]  }
 0x5bc   : > { %v1809_v12 = vsel %vm430_vm1, %v1583_v10, 0  ;;  %2684 = vmatprep.subr.bf16.mxu0 %v2787_v0  ;;  %v2728_v10 = vld [vmem:[%s3284_s8] sm:$0xff]  }
 0x5bd   : > { %2669 = vmatmul.mubr.msk.bf16.vlgmr.msra.gmra.mrb[48].mxu1 %vm426_vm2, %v2908_v14  ;;  %v1895_v14 = vsel %vm430_vm1, %v1585_v15, 0 }
 0x5be   : > { %2679 = vmatpush3.bf16.msra.mxu1 %v1809_v12  ;;  %2675 = vmatmul.mubr.msk.bf16.vlgmr.msra.gmra.mrb[52].mxu0 %vm426_vm2, %v2925_v19  ;;  %v2429_v19 = vld [vmem:[%s3283_s7] ss:$0 sm:$0xff]  ;;  %v2729_v12 = vld [vmem:[%s3285_s9 + $0x8] sm:$0xff]  }
 0x5bf   : > { %2685 = vmatpush3.bf16.msra.mxu0 %v1852_v7  ;;  %2680 = vmatprep.mubr.msk.bf16.mxu1 %vm2788_vm0, %v2787_v0  ;;  %v2730_v7 = vld [vmem:[%s3284_s8 + $0x8] sm:$0xff]  }
 0x5c0   : > { %2690 = vmatprep.subr.bf16.mxu1 %v2787_v0  ;;  %2686 = vmatprep.mubr.msk.bf16.mxu0 %vm2788_vm0, %v2787_v0 }
 0x5c1   : > { %2696 = vmatprep.subr.bf16.mxu0 %v2787_v0 }
 0x5c5   : > { %2681 = vmatmul.mubr.msk.bf16.vlgmr.msra.gmra.mrb[52].mxu1 %vm426_vm2, %v2928_v20 }
 0x5c6   : > { %2691 = vmatpush3.bf16.msra.mxu1 %v1895_v14  ;;  %2687 = vmatmul.mubr.msk.bf16.vlgmr.msra.gmra.mrb[56].mxu0 %vm426_vm2, %v2941_v23 }
 0x5c7   : > { %2692 = vmatprep.mubr.msk.bf16.mxu1 %vm2788_vm0, %v2787_v0  ;;  %2704 = vmatprep.subr.bf16.mxu1 %v2787_v0 }
 0x5c8   : > { %2700 = vmatprep.mubr.msk.bf16.mxu0 %vm2788_vm0, %v2787_v0  ;;  %2697 = vmatpush3.bf16.msra.mxu0 %v2727_v9 }
 0x5c9   : > { %2698 = vmatprep.subr.bf16.mxu0 %v2787_v0 }
 0x5cc   : > { %2699 = vmatpush3.bf16.msra.mxu0 %v2729_v12 }
 0x5cd   : > { %2693 = vmatmul.mubr.msk.bf16.vlgmr.msra.gmra.mrb[56].mxu1 %vm426_vm2, %v2944_v24 }
 0x5ce   : > { %2708 = vmatprep.mubr.msk.bf16.mxu1 %vm2788_vm0, %v2787_v0  ;;  %2705 = vmatpush3.bf16.msra.mxu1 %v2728_v10 }
 0x5cf   : > { %2706 = vmatprep.subr.bf16.mxu1 %v2787_v0 }
 0x5d2   : > { %2707 = vmatpush3.bf16.msra.mxu1 %v2730_v7 }
 0x67f   : > { %v1716_v20 = vpop.f32.mrb[48].mxu0 }
 0x680   : > { %v3171_v23 = vadd.f32 %v2429_v19, %v1716_v20  ;;  %v1630_v4 = vpop.f32.mrb[40].mxu1  ;;  %v2664_v2 = vpop.f32.mrb[49].mxu0 }
 0x681   : > { %v3173_v8 = vadd.f32 %v2429_v19, %v1630_v4  ;;  %v2652_v11 = vpop.f32.mrb[41].mxu1  ;;  %v1719_v18 = vpop.f32.mrb[50].mxu0 }
 0x682   : > { %v1939_v21 = vmul.f32 %v3171_v23, %v3171_v23  ;;  %v1633_v24 = vpop.f32.mrb[42].mxu1  ;;  %v2665_v22 = vpop.f32.mrb[51].mxu0 }
 0x683   : > { %v2653_v25 = vpop.f32.mrb[43].mxu1  ;;  %v1937_v29 = vmul.f32 %v3173_v8, %v3173_v8 }
 0x684   : > { %v1951_v27 = vsel %vm904_vm3, %v1939_v21, 0.0 }
 0x685   : > { %1952 = vadd.xlane.f32.xlu0 %v1951_v27  ;;  %v1945_v33 = vsel %vm904_vm3, %v1937_v29, 0.0 }
 0x688   : > { %v1673_v30 = vpop.f32.mrb[44].mxu1 }
 0x689   : > { %v3181_v34 = vadd.f32 %v2429_v19, %v1673_v30  ;;  %1946 = vadd.xlane.f32.xlu0 %v1945_v33  ;;  %v2658_v58 = vpop.f32.mrb[45].mxu1 }
 0x68a   : > { %v1676_v28 = vpop.f32.mrb[46].mxu1 }
 0x68b   : > { %v1938_v32 = vmul.f32 %v3181_v34, %v3181_v34  ;;  %v2659_v62 = vpop.f32.mrb[47].mxu1 }
 0x68d   : > { %v1948_v36 = vsel %vm904_vm3, %v1938_v32, 0.0 }
 0x68e   : > { %1949 = vadd.xlane.f32.xlu1 %v1948_v36 }
 0x690   : > { %v1759_v38 = vpop.f32.mrb[48].mxu1 }
 0x691   : > { %v3186_v26 = vadd.f32 %v2429_v19, %v1759_v38  ;;  %v1802_v39 = vpop.f32.mrb[52].mxu0  ;;  %v2670_v40 = vpop.f32.mrb[49].mxu1 }
 0x692   : > { %v3188_v16 = vadd.f32 %v2429_v19, %v1802_v39  ;;  %v2676_v31 = vpop.f32.mrb[53].mxu0  ;;  %v1762_v41 = vpop.f32.mrb[50].mxu1 }
 0x693   : > { %v1940_v42 = vmul.f32 %v3186_v26, %v3186_v26  ;;  %v1805_v43 = vpop.f32.mrb[54].mxu0  ;;  %v2671_v17 = vpop.f32.mrb[51].mxu1 }
 0x694   : > { %v1941_v44 = vmul.f32 %v3188_v16, %v3188_v16  ;;  %v2677_v46 = vpop.f32.mrb[55].mxu0 }
 0x695   : > { %v1954_v47 = vsel %vm904_vm3, %v1940_v42, 0.0 }
 0x696   : > { %1955 = vadd.xlane.f32.xlu1 %v1954_v47  ;;  %v1957_v48 = vsel %vm904_vm3, %v1941_v44, 0.0 }
 0x697   : > { %1958 = vadd.xlane.f32.xlu0 %v1957_v48 }
 0x698   : > { %v1845_v50 = vpop.f32.mrb[52].mxu1 }
 0x699   : > { %v3196_v51 = vadd.f32 %v2429_v19, %v1845_v50  ;;  %v1888_v52 = vpop.f32.mrb[56].mxu0  ;;  %v2682_v35 = vpop.f32.mrb[53].mxu1 }
 0x69a   : > { %v3198_v37 = vadd.f32 %v2429_v19, %v1888_v52  ;;  %v1848_v53 = vpop.f32.mrb[54].mxu1  ;;  %v2688_v54 = vpop.f32.mrb[57].mxu0 }
 0x69b   : > { %v1942_v55 = vmul.f32 %v3196_v51, %v3196_v51  ;;  %v2683_v57 = vpop.f32.mrb[55].mxu1  ;;  %v1891_v59 = vpop.f32.mrb[58].mxu0 }
 0x69c   : > { %v1943_v45 = vmul.f32 %v3198_v37, %v3198_v37  ;;  %v2689_v56 = vpop.f32.mrb[59].mxu0 }
 0x69d   : > { %v1960_v49 = vsel %vm904_vm3, %v1942_v55, 0.0 }
 0x69e   : > { %1961 = vadd.xlane.f32.xlu1 %v1960_v49  ;;  %v1963_v60 = vsel %vm904_vm3, %v1943_v45, 0.0 }
 0x69f   : > { %1964 = vadd.xlane.f32.xlu0 %v1963_v60 }
 0x6a0   : > { %v1931_v61 = vpop.f32.mrb[56].mxu1 }
 0x6a1   : > { %v3206_v13 = vadd.f32 %v2429_v19, %v1931_v61  ;;  %v2694_v6 = vpop.f32.mrb[57].mxu1 }
 0x6a2   : > { %v1934_v63 = vpop.f32.mrb[58].mxu1 }
 0x6a3   : > { %v1944_v1 = vmul.f32 %v3206_v13, %v3206_v13  ;;  %v2695_v3 = vpop.f32.mrb[59].mxu1 }
 0x6a5   : > { %v1966_v5 = vsel %vm904_vm3, %v1944_v1, 0.0 }
 0x6a6   : > { %1967 = vadd.xlane.f32.xlu1 %v1966_v5 }
 0x712   : > { %v1953_v15 = vpop.xlane.xlu0 %1952 }
 0x713   : > { %v1971_v14 = vmax.f32 %v1953_v15, 1e-24 }
 0x715   : > { %2763 = vrsqrt.f32 %v1971_v14 }
 0x716   : > { %v1947_v19 = vpop.xlane.xlu0 %1946 }
 0x717   : > { %v1969_v2 = vmax.f32 %v1947_v19, 1e-24 }
 0x71b   : > { %v1950_v20 = vpop.xlane.xlu1 %1949 }
 0x71c   : > { %v1970_v4 = vmax.f32 %v1950_v20, 1e-24 }
 0x71e   : > { %2765 = vrsqrt.f32 %v1970_v4 }
 0x71f   : > { %2767 = vrsqrt.f32 %v1969_v2  ;;  %v2764_v22 = vpop.eup %2763 }
 0x720   : > { %v1987_v27 = vmul.f32 %v2764_v22, %v3171_v23 }
 0x722   : > { %v1995_v62 = vmax.f32 %v1987_v27, 0.0 }
 0x723   : > { %v1956_v11 = vpop.xlane.xlu1 %1955 }
 0x724   : > { %v1972_v18 = vmax.f32 %v1956_v11, 1e-24  ;;  %v1959_v21 = vpop.xlane.xlu0 %1958  ;;  %v2015_v41 = vsel %vm904_vm3, %v1995_v62, 0.0  ;;  %v2080_v44 = vsel %vm904_vm3, %v1995_v62, -inf }
 0x725   : > { %v1973_v24 = vmax.f32 %v1959_v21, 1e-24  ;;  %v2016_v43 = vrot.slane %v2015_v41, 4  ;;  %v2081_v54 = vrot.slane %v2080_v44, 4 }
 0x726   : > { %2769 = vrsqrt.f32 %v1972_v18 }
 0x727   : > { %2771 = vrsqrt.f32 %v1973_v24  ;;  %v2017_v53 = vadd.f32 %v2016_v43, %v2015_v41  ;;  %v2082_v3 = vmax.f32 %v2080_v44, %v2081_v54 }
 0x728   : > { %v2766_v25 = vpop.eup %2765 }
 0x729   : > { %v2768_v0 = vpop.eup %2767  ;;  %v1986_v58 = vmul.f32 %v2766_v25, %v3181_v34  ;;  %v2018_v1 = vrot.slane %v2017_v53, 2  ;;  %v2083_v18 = vrot.slane %v2082_v3, 2 }
 0x72a   : > { %v1985_v28 = vmul.f32 %v2768_v0, %v3173_v8 }
 0x72b   : > { %v1962_v29 = vpop.xlane.xlu1 %1961  ;;  %v1994_v38 = vmax.f32 %v1986_v58, 0.0  ;;  %v2019_v11 = vadd.f32 %v2018_v1, %v2017_v53 }
 0x72c   : > { %v1974_v30 = vmax.f32 %v1962_v29, 1e-24  ;;  %v1965_v33 = vpop.xlane.xlu0 %1964  ;;  %v1993_v40 = vmax.f32 %v1985_v28, 0.0 }
 0x72d   : > { %v1975_v32 = vmax.f32 %v1965_v33, 1e-24  ;;  %v2008_v23 = vsel %vm904_vm3, %v1994_v38, 0.0  ;;  %v2073_v8 = vsel %vm904_vm3, %v1994_v38, -inf  ;;  %v2020_v38 = vrot.slane %v2019_v11, 1 }
 0x72e   : > { %2773 = vrsqrt.f32 %v1974_v30  ;;  %v2001_v34 = vsel %vm904_vm3, %v1993_v40, 0.0  ;;  %v2066_v47 = vsel %vm904_vm3, %v1993_v40, -inf  ;;  %v2009_v48 = vrot.slane %v2008_v23, 4 }
 0x72f   : > { %2775 = vrsqrt.f32 %v1975_v32  ;;  %v2002_v50 = vrot.slane %v2001_v34, 4  ;;  %v2067_v57 = vrot.slane %v2066_v47, 4 }
 0x730   : > { %v2770_v36 = vpop.eup %2769  ;;  %v2010_v45 = vadd.f32 %v2009_v48, %v2008_v23 }
 0x731   : > { %v2772_v39 = vpop.eup %2771  ;;  %v1988_v31 = vmul.f32 %v2770_v36, %v3186_v26  ;;  %v2074_v26 = vrot.slane %v2073_v8, 4  ;;  %v2003_v60 = vadd.f32 %v2002_v50, %v2001_v34  ;;  %v2068_v10 = vmax.f32 %v2066_v47, %v2067_v57 }
 0x732   : > { %v1989_v42 = vmul.f32 %v2772_v39, %v3188_v16  ;;  %v2011_v7 = vrot.slane %v2010_v45, 2  ;;  %v2084_v39 = vmax.f32 %v2082_v3, %v2083_v18 }
 0x733   : > { %v1996_v17 = vmax.f32 %v1988_v31, 0.0  ;;  %v2075_v61 = vmax.f32 %v2073_v8, %v2074_v26  ;;  %v1968_v14 = vpop.xlane.xlu1 %1967  ;;  %v2004_v19 = vrot.slane %v2003_v60, 2  ;;  %v2069_v22 = vrot.slane %v2068_v10, 2 }
 0x734   : > { %v1997_v52 = vmax.f32 %v1989_v42, 0.0  ;;  %v1976_v27 = vmax.f32 %v1968_v14, 1e-24  ;;  %v2012_v29 = vadd.f32 %v2011_v7, %v2010_v45  ;;  %v2085_v48 = vrot.slane %v2084_v39, 1 }
 0x735   : > { %v2022_v16 = vsel %vm904_vm3, %v1996_v17, 0.0  ;;  %v2087_v56 = vsel %vm904_vm3, %v1996_v17, -inf  ;;  %v2076_v20 = vrot.slane %v2075_v61, 2  ;;  %v2005_v28 = vadd.f32 %v2004_v19, %v2003_v60 }
 0x736   : > { %v2023_v6 = vrot.slane %v2022_v16, 4  ;;  %v2029_v63 = vsel %vm904_vm3, %v1997_v52, 0.0  ;;  %v2088_v12 = vrot.slane %v2087_v56, 4  ;;  %v2070_v41 = vmax.f32 %v2068_v10, %v2069_v22 }
 0x737   : > { %v2077_v32 = vmax.f32 %v2075_v61, %v2076_v20  ;;  %2777 = vrsqrt.f32 %v1976_v27  ;;  %v2013_v43 = vrot.slane %v2012_v29, 1  ;;  %v2006_v17 = vrot.slane %v2005_v28, 1 }
 0x738   : > { %v2774_v46 = vpop.eup %2773  ;;  %v2024_v4 = vadd.f32 %v2023_v6, %v2022_v16  ;;  %v2089_v25 = vmax.f32 %v2087_v56, %v2088_v12  ;;  %v2086_v60 = vmax.f32 %v2084_v39, %v2085_v48 }
 0x739   : > { %v2776_v35 = vpop.eup %2775  ;;  %v1990_v55 = vmul.f32 %v2774_v46, %v3196_v51  ;;  %v2094_v51 = vsel %vm904_vm3, %v1997_v52, -inf  ;;  %v2078_v44 = vrot.slane %v2077_v32, 1  ;;  %v2021_v52 = vadd.f32 %v2020_v38, %v2019_v11 }
 0x73a   : > { %v1991_v59 = vmul.f32 %v2776_v35, %v3198_v37  ;;  %v2030_v37 = vrot.slane %v2029_v63, 4  ;;  %v2095_v21 = vrot.slane %v2094_v51, 4  ;;  %v2025_v62 = vrot.slane %v2024_v4, 2 }
 0x73b   : > { %v1998_v49 = vmax.f32 %v1990_v55, 0.0  ;;  %v2090_v23 = vrot.slane %v2089_v25, 2  ;;  %v2071_v35 = vrot.slane %v2070_v41, 1  ;;  %v2014_v16 = vadd.f32 %v2013_v43, %v2012_v29 }
 0x73c   : > { %v1999_v9 = vmax.f32 %v1991_v59, 0.0  ;;  %v2031_v30 = vadd.f32 %v2030_v37, %v2029_v63  ;;  %v2096_v40 = vmax.f32 %v2094_v51, %v2095_v21  ;;  %v2026_v46 = vadd.f32 %v2025_v62, %v2024_v4 }
 0x73d   : > { %v2036_v5 = vsel %vm904_vm3, %v1998_v49, 0.0  ;;  %v2101_v15 = vsel %vm904_vm3, %v1998_v49, -inf  ;;  %v2091_v53 = vmax.f32 %v2089_v25, %v2090_v23  ;;  %v2007_v59 = vadd.f32 %v2006_v17, %v2005_v28 }
 0x73e   : > { %v2037_v2 = vrot.slane %v2036_v5, 4  ;;  %v2043_v24 = vsel %vm904_vm3, %v1999_v9, 0.0  ;;  %v2102_v0 = vrot.slane %v2101_v15, 4  ;;  %v2108_v58 = vsel %vm904_vm3, %v1999_v9, -inf }
 0x73f   : > { %v2044_v33 = vrot.slane %v2043_v24, 4  ;;  %v2109_v31 = vrot.slane %v2108_v58, 4  ;;  %v2032_v34 = vrot.slane %v2031_v30, 2  ;;  %v2097_v50 = vrot.slane %v2096_v40, 2 }
 0x740   : > { %v2038_v36 = vadd.f32 %v2037_v2, %v2036_v5  ;;  %v2103_v42 = vmax.f32 %v2101_v15, %v2102_v0  ;;  %v2079_v45 = vmax.f32 %v2077_v32, %v2078_v44  ;;  %v2027_v56 = vrot.slane %v2026_v46, 1 }
 0x741   : > { %v2045_v8 = vadd.f32 %v2044_v33, %v2043_v24  ;;  %v2110_v26 = vmax.f32 %v2108_v58, %v2109_v31  ;;  %v2033_v55 = vadd.f32 %v2032_v34, %v2031_v30  ;;  %v2098_v61 = vmax.f32 %v2096_v40, %v2097_v50  ;;  %v2778_v51 = vpop.eup %2777 }
 0x742   : > { %v2039_v47 = vrot.slane %v2038_v36, 2  ;;  %v2104_v54 = vrot.slane %v2103_v42, 2  ;;  %v3246_v63 = vmul.f32 0.125, %v2021_v52  ;;  %v2072_v1 = vmax.f32 %v2070_v41, %v2071_v35 }
 0x743   : > { %v2046_v57 = vrot.slane %v2045_v8, 2  ;;  %v2111_v6 = vrot.slane %v2110_v26, 2  ;;  %v2092_v3 = vrot.slane %v2091_v53, 1  ;;  %v2059_v9 = vmul.f32 0.125, %v2014_v16 }
 0x744   : > { %v2040_v49 = vadd.f32 %v2039_v47, %v2038_v36  ;;  %v2105_v5 = vmax.f32 %v2103_v42, %v2104_v54  ;;  %v2034_v10 = vrot.slane %v2033_v55, 1  ;;  %v2058_v7 = vmul.f32 0.125, %v2007_v59 }
 0x745   : > { %v2047_v12 = vadd.f32 %v2046_v57, %v2045_v8  ;;  %v2135_v37 = vpack.c.bf16 %v2079_v45, %v2079_v45  ;;  %v2028_v15 = vadd.f32 %v2027_v56, %v2026_v46  ;;  %v2136_v19 = vpack.c.bf16 %v2086_v60, %v2086_v60 }
 0x746   : > { %v2041_v14 = vrot.slane %v2040_v49, 1  ;;  %v2099_v20 = vrot.slane %v2098_v61, 1  ;;  %v2112_v4 = vmax.f32 %v2110_v26, %v2111_v6  ;;  %v1992_v2 = vmul.f32 %v2778_v51, %v3206_v13 }
 0x747   : > { %v2124_v11 = vpack.c.bf16 %v3246_v63, %v3246_v63  ;;  %v2134_v18 = vpack.c.bf16 %v2072_v1, %v2072_v1  ;;  %v2093_v21 = vmax.f32 %v2091_v53, %v2092_v3  ;;  %v2106_v24 = vrot.slane %v2105_v5, 1 }
 0x748   : > { %v2123_v22 = vpack.c.bf16 %v2059_v9, %v2059_v9  ;;  %v2035_v25 = vadd.f32 %v2034_v10, %v2033_v55  ;;  %v2048_v0 = vrot.slane %v2047_v12, 1  ;;  %v2000_v27 = vmax.f32 %v1992_v2, 0.0 }
 0x749   : > { %v2122_v29 = vpack.c.bf16 %v2058_v7, %v2058_v7  ;;  %v2155_v30 = vunpack.c.l.b16 %v2135_v37  ;;  %v2061_v33 = vmul.f32 0.125, %v2028_v15  ;;  %v2042_v58 = vadd.f32 %v2041_v14, %v2040_v49 }
 0x74a   : > { %v2100_v28 = vmax.f32 %v2098_v61, %v2099_v20  ;;  %v2113_v32 = vrot.slane %v2112_v4, 1  ;;  %v2050_v13 = vsel %vm904_vm3, %v2000_v27, 0.0  ;;  %v2115_v62 = vsel %vm904_vm3, %v2000_v27, -inf }
 0x74b   : > { %v2137_v36 = vpack.c.bf16 %v2093_v21, %v2093_v21  ;;  %v2107_v38 = vmax.f32 %v2105_v5, %v2106_v24  ;;  %v2051_v39 = vrot.slane %v2050_v13, 4  ;;  %v2116_v40 = vrot.slane %v2115_v62, 4 }
 0x74c   : > { %v2154_v31 = vunpack.c.l.b16 %v2134_v18  ;;  %v2241_v41 = vunpack.c.l.b16 %v2123_v22  ;;  %v2062_v23 = vmul.f32 0.125, %v2035_v25  ;;  %v2049_v42 = vadd.f32 %v2048_v0, %v2047_v12 }
 0x74d   : > { %v2125_v43 = vpack.c.bf16 %v2061_v33, %v2061_v33  ;;  %v2063_v34 = vmul.f32 0.125, %v2042_v58  ;;  %v2052_v8 = vadd.f32 %v2051_v39, %v2050_v13  ;;  %v2117_v17 = vmax.f32 %v2115_v62, %v2116_v40 }
 0x74e   : > { %v2240_v44 = vunpack.c.l.b16 %v2122_v29  ;;  %v2163_v46 = vsel %vm2162_vm4, %v2155_v30, %v2154_v31  ;;  %v2138_v47 = vpack.c.bf16 %v2100_v28, %v2100_v28  ;;  %v2114_v48 = vmax.f32 %v2112_v4, %v2113_v32 }
 0x74f   : > { %v2157_v50 = vunpack.c.l.b16 %v2137_v36  ;;  %v2139_v26 = vpack.c.bf16 %v2107_v38, %v2107_v38  ;;  %v2053_v52 = vrot.slane %v2052_v8, 2  ;;  %v2118_v35 = vrot.slane %v2117_v17, 2  ;;  %v2444_v36 = vld [vmem:[%s3286_s10] ss:$0 sm:$0xff] }
 0x750   : > { %v2156_v53 = vunpack.c.l.b16 %v2136_v19  ;;  %v2248_v54 = vsel %vm2162_vm4, %v2241_v41, %v2240_v44  ;;  %v2126_v16 = vpack.c.bf16 %v2062_v23, %v2062_v23  ;;  %v2064_v55 = vmul.f32 0.125, %v2049_v42 }
 0x751   : > { %v2243_v57 = vunpack.c.l.b16 %v2125_v43  ;;  %v2127_v59 = vpack.c.bf16 %v2063_v34, %v2063_v34  ;;  %v2054_v45 = vadd.f32 %v2053_v52, %v2052_v8  ;;  %v2119_v56 = vmax.f32 %v2117_v17, %v2118_v35 }
 0x752   : > { %v2242_v49 = vunpack.c.l.b16 %v2124_v11  ;;  %v2158_v60 = vunpack.c.l.b16 %v2138_v47  ;;  %v2140_v61 = vpack.c.bf16 %v2114_v48, %v2114_v48  ;;  %v2165_v6 = vsel %vm2164_vm5, %v2156_v53, %v2163_v46 }
 0x753   : > { %v2159_v63 = vunpack.c.l.b16 %v2139_v26  ;;  %v2055_v1 = vrot.slane %v2054_v45, 1  ;;  %v2120_v3 = vrot.slane %v2119_v56, 1  ;;  %v2167_v5 = vsel %vm2166_vm6, %v2157_v50, %v2165_v6 }
 0x754   : > { %v2244_v9 = vunpack.c.l.b16 %v2126_v16  ;;  %v2128_v10 = vpack.c.bf16 %v2064_v55, %v2064_v55  ;;  %v2249_v12 = vsel %vm2164_vm5, %v2242_v49, %v2248_v54  ;;  %v2245_v51 = vunpack.c.l.b16 %v2127_v59 }
 0x755   : > { %v2121_v7 = vmax.f32 %v2119_v56, %v2120_v3  ;;  %v2056_v37 = vadd.f32 %v2055_v1, %v2054_v45  ;;  %v2250_v15 = vsel %vm2166_vm6, %v2243_v57, %v2249_v12  ;;  %v2160_v14 = vunpack.c.l.b16 %v2140_v61 }
 0x756   : > { %v2169_v19 = vsel %vm2168_vm7, %v2158_v60, %v2167_v5  ;;  %v2246_v11 = vunpack.c.l.b16 %v2128_v10  ;;  %v2251_v18 = vsel %vm2168_vm7, %v2244_v9, %v2250_v15 }
 0x757   : > { %v2141_v20 = vpack.c.bf16 %v2121_v7, %v2121_v7  ;;  %v2171_v4 = vsel %vm2170_vm8, %v2159_v63, %v2169_v19  ;;  %v2065_v2 = vmul.f32 0.125, %v2056_v37  ;;  %v2252_v22 = vsel %vm2170_vm8, %v2245_v51, %v2251_v18 }
 0x758   : > { %v2173_v25 = vsel %vm2172_vm9, %v2160_v14, %v2171_v4  ;;  %v2253_v30 = vsel %vm2172_vm9, %v2246_v11, %v2252_v22 }
 0x759   : > { %v2161_v21 = vunpack.c.l.b16 %v2141_v20  ;;  %v2129_v24 = vpack.c.bf16 %v2065_v2, %v2065_v2 }
 0x75b   : > { %v2175_v0 = vsel %vm2174_vm10, %v2161_v21, %v2173_v25  ;;  %v2247_v27 = vunpack.c.l.b16 %v2129_v24 }
 0x75c   : > { %v2176_v29 = vpack.c.b16 %v2175_v0, %v2175_v0 }
 0x75d   : > { %v2254_v33 = vsel %vm2174_vm10, %v2247_v27, %v2253_v30 }
 0x75e   : > { %2701 = vmatmul.mubr.msk.bf16.vlgmr.msra.gmra.mrb[60].mxu0 %vm904_vm3, %v2176_v29  ;;  %v2255_v58 = vpack.c.b16 %v2254_v33, %v2254_v33 }
 0x760   : > { %2709 = vmatmul.mubr.msk.bf16.vlgmr.msra.gmra.mrb[60].mxu1 %vm904_vm3, %v2255_v58 }
 0x831   : > { %v2226_v28 = vpop.f32.mrb[60].mxu0 }
 0x832   : > { %v2702_v32 = vpop.f32.mrb[61].mxu0 }
 0x833   : > { %v2229_v13 = vpop.f32.mrb[62].mxu0  ;;  %v2305_v62 = vpop.f32.mrb[60].mxu1 }
 0x834   : > { %v2306_v38 = vadd.f32 %v2305_v62, %v2226_v28  ;;  %v2703_v39 = vpop.f32.mrb[63].mxu0  ;;  %v2710_v40 = vpop.f32.mrb[61].mxu1 }
 0x835   : > { %v2308_v31 = vpop.f32.mrb[62].mxu1 }
 0x836   : > { %v2318_v41 = vadd.f32 %v2444_v36, %v2306_v38  ;;  %v2711_v23 = vpop.f32.mrb[63].mxu1 }
 0x838   : > { %2319 = vst [vmem:[%s408_s22] sm:$0xff] %v2318_v41 }
 0x839 PF: > { %s21_s17 = sadd.s32 1, %s2785_s17  }
 0x83a   : > { %p18_p5 = scmp.ge.s32.totalorder %s21_s17, 4  }
 0x83c   :  { %20 = sbr.rel (!%p18_p5) target bundleno = 1 (0x1), region = 97 }

</bundles_post_ra>
